<compile_context>
chip_gen: v7x
topology: tpu7x:2x2x1
jax: 0.10.0
libtpu: 0.0.40
codegen_flags: <defaults>
</compile_context>

<pallas_src>
import math
import functools

import jax
import jax.numpy as jnp
from jax.experimental import pallas as pl
from jax.experimental.pallas import tpu as pltpu


def _token_performer_kernel(
    x_ref,
    n1_w_ref, n1_b_ref,
    kqv_w_ref, kqv_b_ref,
    w_t_ref,
    proj_w_ref, proj_b_ref,
    n2_w_ref, n2_b_ref,
    mlp1_w_ref, mlp1_b_ref,
    mlp2_w_ref, mlp2_b_ref,
    out_ref,
    *, epsilon):
    bs, T, dim = x_ref.shape
    emb = proj_w_ref.shape[0]
    m = w_t_ref.shape[1]

    # Fold the batch block into the row (M) dimension for all shared-weight
    # matmuls (weights are identical across batch) -> better MXU fill.
    x = x_ref[...].reshape(bs * T, dim)                            # (bs*T, dim)

    # ---- LayerNorm 1 (eps=1e-5, biased variance, as nn.LayerNorm) ----
    mu = jnp.mean(x, axis=-1, keepdims=True)
    var = jnp.mean((x - mu) ** 2, axis=-1, keepdims=True)
    xn = (x - mu) * jax.lax.rsqrt(var + 1e-5) * n1_w_ref[...] + n1_b_ref[...]

    # ---- fused kqv projection (single MXU matmul); split order (k, q, v) ----
    kqv = jnp.dot(xn, kqv_w_ref[...],
                  preferred_element_type=jnp.float32) + kqv_b_ref[...]
    k = kqv[:, :emb]
    q = kqv[:, emb:2 * emb]
    v = kqv[:, 2 * emb:]

    # ---- performer feature map: prm_exp (row-wise, batch-agnostic) ----
    inv_sqrt_m = 1.0 / math.sqrt(m)
    w_t = w_t_ref[...]                                             # (emb, m)

    def prm_exp(z):
        xd = jnp.sum(z * z, axis=-1, keepdims=True) * 0.5          # (rows, 1)
        wtx = jnp.dot(z, w_t, preferred_element_type=jnp.float32)  # (rows, m)
        return jnp.exp(wtx - xd) * inv_sqrt_m

    kp = prm_exp(k)                                                # (bs*T, m)
    qp = prm_exp(q)                                                # (bs*T, m)

    # ---- per-batch reductions (kp_sum / D / kptv): short static loop ----
    y_parts = []
    for b in range(bs):
        lo = b * T
        kp_b = kp[lo:lo + T]                                       # (T, m)
        qp_b = qp[lo:lo + T]                                       # (T, m)
        v_b = v[lo:lo + T]                                         # (T, emb)

        kp_sum = jnp.sum(kp_b, axis=0, keepdims=True)              # (1, m)
        D_b = jnp.sum(qp_b * kp_sum, axis=-1, keepdims=True)       # (T, 1)
        # kptv_t[i, n] = sum_t kp_b[t, i] * v_b[t, n]  -> (m, emb); no .T used.
        kptv_t = jax.lax.dot_general(
            kp_b, v_b, (((0,), (0,)), ((), ())),
            preferred_element_type=jnp.float32)
        y_b = jnp.dot(qp_b, kptv_t, preferred_element_type=jnp.float32)
        y_b = y_b * pl.reciprocal(D_b + epsilon, approx=True)      # EUP rcp
        y_parts.append(y_b)
    y = y_parts[0] if bs == 1 else jnp.concatenate(y_parts, axis=0)

    # ---- proj + residual with v (dropout = identity at inference) ----
    attn = v + jnp.dot(y, proj_w_ref[...],
                       preferred_element_type=jnp.float32) + proj_b_ref[...]

    # ---- LayerNorm 2 ----
    mu2 = jnp.mean(attn, axis=-1, keepdims=True)
    var2 = jnp.mean((attn - mu2) ** 2, axis=-1, keepdims=True)
    an = (attn - mu2) * jax.lax.rsqrt(var2 + 1e-5) * n2_w_ref[...] + n2_b_ref[...]

    # ---- MLP: Linear -> GELU (tanh approx on EUP) -> Linear ----
    h = jnp.dot(an, mlp1_w_ref[...],
                preferred_element_type=jnp.float32) + mlp1_b_ref[...]
    c = math.sqrt(2.0 / math.pi)
    h = 0.5 * h * (1.0 + jnp.tanh(c * (h + 0.044715 * (h * h * h))))
    mlp_out = jnp.dot(h, mlp2_w_ref[...],
                      preferred_element_type=jnp.float32) + mlp2_b_ref[...]

    out = attn + mlp_out                                           # (bs*T, emb)
    out_ref[...] = out.reshape(bs, T, emb)


def token_performer_forward(x, kparams, *, epsilon=1e-8, batch_block=None):
    """x: (B, T, dim) f32.  Returns (B, T, emb) f32.

    batch_block: batch elements folded per grid step.  Default = B (grid of 1,
    best MXU fill on single-TC v5e/v6e).  On v7x set e.g. batch_block = B // 2
    so the grid has >= 2 parallel steps and both TensorCores get work.
    """
    B, T, dim = x.shape
    emb = kparams["proj_w_t"].shape[0]
    bs = B if batch_block is None else batch_block
    assert B % bs == 0, "batch_block must divide the batch size"

    args = (
        kparams["n1_w"], kparams["n1_b"],
        kparams["kqv_w_t"], kparams["kqv_b"],
        kparams["w_t"],
        kparams["proj_w_t"], kparams["proj_b"],
        kparams["n2_w"], kparams["n2_b"],
        kparams["mlp1_w_t"], kparams["mlp1_b"],
        kparams["mlp2_w_t"], kparams["mlp2_b"],
    )

    in_specs = [pl.BlockSpec((bs, T, dim), lambda b: (b, 0, 0))]
    # Weights/biases: full-array blocks, constant index map -> VMEM resident,
    # not re-DMA'd across steps (block index never changes).
    in_specs += [pl.BlockSpec(a.shape, lambda b: (0, 0)) for a in args]

    kernel = functools.partial(_token_performer_kernel, epsilon=epsilon)
    return pl.pallas_call(
        kernel,
        grid=(B // bs,),
        in_specs=in_specs,
        out_specs=pl.BlockSpec((bs, T, emb), lambda b: (b, 0, 0)),
        out_shape=jax.ShapeDtypeStruct((B, T, emb), jnp.float32),
        compiler_params=pltpu.CompilerParams(dimension_semantics=("parallel",)),
    )(x, *args)


def init_params(key, dim, in_dim, head_cnt=1, kernel_ratio=0.5):
    emb = in_dim * head_cnt
    m = int(emb * kernel_ratio)
    ks = jax.random.split(key, 8)

    def lin(k, out_f, in_f):
        kw, kb = jax.random.split(k)
        bound = 1.0 / math.sqrt(in_f)
        w = jax.random.uniform(kw, (out_f, in_f), jnp.float32, -bound, bound)
        b = jax.random.uniform(kb, (out_f,), jnp.float32, -bound, bound)
        return w, b

    kqv_w, kqv_b = lin(ks[0], 3 * emb, dim)
    proj_w, proj_b = lin(ks[1], emb, emb)
    mlp1_w, mlp1_b = lin(ks[2], emb, emb)
    mlp2_w, mlp2_b = lin(ks[3], emb, emb)
    n1_w = jnp.ones((dim,), jnp.float32); n1_b = jnp.zeros((dim,), jnp.float32)
    n2_w = jnp.ones((emb,), jnp.float32); n2_b = jnp.zeros((emb,), jnp.float32)
    w = jax.nn.initializers.orthogonal()(ks[4], (m, emb), jnp.float32) * math.sqrt(m)

    torch_like = dict(kqv_w=kqv_w, kqv_b=kqv_b, proj_w=proj_w, proj_b=proj_b,
                      mlp1_w=mlp1_w, mlp1_b=mlp1_b, mlp2_w=mlp2_w, mlp2_b=mlp2_b,
                      n1_w=n1_w, n1_b=n1_b, n2_w=n2_w, n2_b=n2_b, w=w)

    # kernel-friendly: pre-transposed weights (x @ W), fused kqv weight/bias,
    # 2-D (1, F) bias/scale rows.
    kparams = dict(
        n1_w=n1_w[None, :], n1_b=n1_b[None, :],
        kqv_w_t=kqv_w.T,                      # (dim, 3*emb), cols = [k | q | v]
        kqv_b=kqv_b[None, :],                 # (1, 3*emb)
        w_t=w.T,                              # (emb, m)
        proj_w_t=proj_w.T, proj_b=proj_b[None, :],
        n2_w=n2_w[None, :], n2_b=n2_b[None, :],
        mlp1_w_t=mlp1_w.T, mlp1_b=mlp1_b[None, :],
        mlp2_w_t=mlp2_w.T, mlp2_b=mlp2_b[None, :],
    )
    return torch_like, kparams, m


def reference(x, p, m, epsilon=1e-8):
    def ln(z, w, b):
        mu = z.mean(-1, keepdims=True)
        var = ((z - mu) ** 2).mean(-1, keepdims=True)
        return (z - mu) / jnp.sqrt(var + 1e-5) * w + b

    xn = ln(x, p["n1_w"], p["n1_b"])
    kqv = xn @ p["kqv_w"].T + p["kqv_b"]
    k, q, v = jnp.split(kqv, 3, axis=-1)

    def prm(z):
        xd = (z * z).sum(-1, keepdims=True) / 2
        wtx = jnp.einsum("bti,mi->btm", z, p["w"])
        return jnp.exp(wtx - xd) / math.sqrt(m)

    kp, qp = prm(k), prm(q)
    D = jnp.einsum("btm,bm->bt", qp, kp.sum(1))[..., None]
    kptv = jnp.einsum("btn,btm->bnm", v, kp)
    y = jnp.einsum("btm,bnm->btn", qp, kptv) / (D + epsilon)
    y = v + (y @ p["proj_w"].T + p["proj_b"])
    yn = ln(y, p["n2_w"], p["n2_b"])
    h = jax.nn.gelu(yn @ p["mlp1_w"].T + p["mlp1_b"], approximate=False)
    return y + (h @ p["mlp2_w"].T + p["mlp2_b"])


if __name__ == "__main__":
    key = jax.random.PRNGKey(0)
    kx, kparam = jax.random.split(key)

    B, T, dim, in_dim = 2, 16, 48, 32           # emb = 32, m = 16
    torch_like, kparams, m = init_params(kparam, dim, in_dim)
    x = jax.random.normal(kx, (B, T, dim), jnp.float32)

    out = token_performer_forward(x, kparams)
    out = jax.block_until_ready(out)

    with jax.default_matmul_precision("float32"):
        ref = jax.block_until_ready(reference(x, torch_like, m))

    assert out.shape == (B, T, in_dim)
    # atol slightly above 2e-3: kernel uses tanh-approx GELU + approx EUP
    # reciprocal, while the reference uses exact-erf GELU and a true divide
    # (combined deviation well under ~1e-3 at these scales).
    if not jnp.allclose(out, ref, rtol=2e-3, atol=3e-3):
        raise AssertionError(
            f"mismatch: max abs diff = {float(jnp.max(jnp.abs(out - ref)))}")
    print("KERNEL_OK")
</pallas_src>

<mosaic_0001>
module attributes {stable_mosaic.version = 11 : i64} {
  func.func @_token_performer_kernel(%arg0: i32, %arg1: memref<2x16x48xf32, #tpu.memory_space<vmem>>, %arg2: memref<1x48xf32, #tpu.memory_space<vmem>>, %arg3: memref<1x48xf32, #tpu.memory_space<vmem>>, %arg4: memref<48x96xf32, #tpu.memory_space<vmem>>, %arg5: memref<1x96xf32, #tpu.memory_space<vmem>>, %arg6: memref<32x16xf32, #tpu.memory_space<vmem>>, %arg7: memref<32x32xf32, #tpu.memory_space<vmem>>, %arg8: memref<1x32xf32, #tpu.memory_space<vmem>>, %arg9: memref<1x32xf32, #tpu.memory_space<vmem>>, %arg10: memref<1x32xf32, #tpu.memory_space<vmem>>, %arg11: memref<32x32xf32, #tpu.memory_space<vmem>>, %arg12: memref<1x32xf32, #tpu.memory_space<vmem>>, %arg13: memref<32x32xf32, #tpu.memory_space<vmem>>, %arg14: memref<1x32xf32, #tpu.memory_space<vmem>>, %arg15: memref<2x16x32xf32, #tpu.memory_space<vmem>>) attributes {dimension_semantics = [#tpu.dimension_semantics<parallel>], iteration_bounds = array<i64: 1>, scalar_prefetch = 0 : i64, scratch_operands = 0 : i64, tpu.core_type = #tpu.core_type<tc>, window_params = [{transform_indices = @transform_0, window_bounds = array<i64: 2, 16, 48>}, {pipeline_mode = #tpu.pipeline_mode<synchronous>, transform_indices = @transform_1, window_bounds = array<i64: 1, 48>}, {pipeline_mode = #tpu.pipeline_mode<synchronous>, transform_indices = @transform_2, window_bounds = array<i64: 1, 48>}, {pipeline_mode = #tpu.pipeline_mode<synchronous>, transform_indices = @transform_3, window_bounds = array<i64: 48, 96>}, {pipeline_mode = #tpu.pipeline_mode<synchronous>, transform_indices = @transform_4, window_bounds = array<i64: 1, 96>}, {pipeline_mode = #tpu.pipeline_mode<synchronous>, transform_indices = @transform_5, window_bounds = array<i64: 32, 16>}, {pipeline_mode = #tpu.pipeline_mode<synchronous>, transform_indices = @transform_6, window_bounds = array<i64: 32, 32>}, {pipeline_mode = #tpu.pipeline_mode<synchronous>, transform_indices = @transform_7, window_bounds = array<i64: 1, 32>}, {pipeline_mode = #tpu.pipeline_mode<synchronous>, transform_indices = @transform_8, window_bounds = array<i64: 1, 32>}, {pipeline_mode = #tpu.pipeline_mode<synchronous>, transform_indices = @transform_9, window_bounds = array<i64: 1, 32>}, {pipeline_mode = #tpu.pipeline_mode<synchronous>, transform_indices = @transform_10, window_bounds = array<i64: 32, 32>}, {pipeline_mode = #tpu.pipeline_mode<synchronous>, transform_indices = @transform_11, window_bounds = array<i64: 1, 32>}, {pipeline_mode = #tpu.pipeline_mode<synchronous>, transform_indices = @transform_12, window_bounds = array<i64: 32, 32>}, {pipeline_mode = #tpu.pipeline_mode<synchronous>, transform_indices = @transform_13, window_bounds = array<i64: 1, 32>}, {transform_indices = @transform_14, window_bounds = array<i64: 2, 16, 32>}]} {
    %c0 = arith.constant 0 : index
    %c0_0 = arith.constant 0 : index
    %c0_1 = arith.constant 0 : index
    %0 = vector.load %arg1[%c0, %c0_0, %c0_1] : memref<2x16x48xf32, #tpu.memory_space<vmem>>, vector<2x16x48xf32>
    %1 = vector.shape_cast %0 : vector<2x16x48xf32> to vector<32x48xf32>
    %cst = arith.constant dense<0.000000e+00> : vector<32xf32>
    %2 = vector.multi_reduction <add>, %1, %cst [1] : vector<32x48xf32> to vector<32xf32>
    %3 = vector.shape_cast %2 : vector<32xf32> to vector<32x1xf32>
    %cst_2 = arith.constant 4.800000e+01 : f32
    %4 = vector.broadcast %cst_2 : f32 to vector<32x1xf32>
    %5 = arith.divf %3, %4 : vector<32x1xf32>
    %6 = vector.broadcast %5 : vector<32x1xf32> to vector<32x48xf32>
    %7 = arith.subf %1, %6 : vector<32x48xf32>
    %8 = arith.mulf %7, %7 : vector<32x48xf32>
    %cst_3 = arith.constant dense<0.000000e+00> : vector<32xf32>
    %9 = vector.multi_reduction <add>, %8, %cst_3 [1] : vector<32x48xf32> to vector<32xf32>
    %10 = vector.shape_cast %9 : vector<32xf32> to vector<32x1xf32>
    %cst_4 = arith.constant 4.800000e+01 : f32
    %11 = vector.broadcast %cst_4 : f32 to vector<32x1xf32>
    %12 = arith.divf %10, %11 : vector<32x1xf32>
    %13 = vector.broadcast %5 : vector<32x1xf32> to vector<32x48xf32>
    %14 = arith.subf %1, %13 : vector<32x48xf32>
    %cst_5 = arith.constant 9.99999974E-6 : f32
    %15 = vector.broadcast %cst_5 : f32 to vector<32x1xf32>
    %16 = arith.addf %12, %15 : vector<32x1xf32>
    %17 = math.rsqrt %16 : vector<32x1xf32>
    %18 = vector.broadcast %17 : vector<32x1xf32> to vector<32x48xf32>
    %19 = arith.mulf %14, %18 : vector<32x48xf32>
    %c0_6 = arith.constant 0 : index
    %c0_7 = arith.constant 0 : index
    %20 = vector.load %arg2[%c0_6, %c0_7] : memref<1x48xf32, #tpu.memory_space<vmem>>, vector<1x48xf32>
    %21 = vector.broadcast %20 : vector<1x48xf32> to vector<32x48xf32>
    %22 = arith.mulf %19, %21 : vector<32x48xf32>
    %c0_8 = arith.constant 0 : index
    %c0_9 = arith.constant 0 : index
    %23 = vector.load %arg3[%c0_8, %c0_9] : memref<1x48xf32, #tpu.memory_space<vmem>>, vector<1x48xf32>
    %24 = vector.broadcast %23 : vector<1x48xf32> to vector<32x48xf32>
    %25 = arith.addf %22, %24 : vector<32x48xf32>
    %c0_10 = arith.constant 0 : index
    %c0_11 = arith.constant 0 : index
    %26 = vector.load %arg4[%c0_10, %c0_11] : memref<48x96xf32, #tpu.memory_space<vmem>>, vector<48x96xf32>
    %cst_12 = arith.constant dense<0.000000e+00> : vector<32x96xf32>
    %27 = tpu.matmul %25, %26, %cst_12 {dimension_numbers = #tpu.dot_dimension_numbers<[1], [0], [0], [1], [0, 0, 1, 1], [], []>} : vector<32x48xf32>, vector<48x96xf32>, vector<32x96xf32> -> vector<32x96xf32>
    %c0_13 = arith.constant 0 : index
    %c0_14 = arith.constant 0 : index
    %28 = vector.load %arg5[%c0_13, %c0_14] : memref<1x96xf32, #tpu.memory_space<vmem>>, vector<1x96xf32>
    %29 = vector.broadcast %28 : vector<1x96xf32> to vector<32x96xf32>
    %30 = arith.addf %27, %29 : vector<32x96xf32>
    %31 = vector.extract_strided_slice %30 {offsets = [0, 0], sizes = [32, 32], strides = [1, 1]} : vector<32x96xf32> to vector<32x32xf32>
    %32 = vector.extract_strided_slice %30 {offsets = [0, 32], sizes = [32, 32], strides = [1, 1]} : vector<32x96xf32> to vector<32x32xf32>
    %33 = vector.extract_strided_slice %30 {offsets = [0, 64], sizes = [32, 32], strides = [1, 1]} : vector<32x96xf32> to vector<32x32xf32>
    %c0_15 = arith.constant 0 : index
    %c0_16 = arith.constant 0 : index
    %34 = vector.load %arg6[%c0_15, %c0_16] : memref<32x16xf32, #tpu.memory_space<vmem>>, vector<32x16xf32>
    %35 = arith.mulf %31, %31 : vector<32x32xf32>
    %cst_17 = arith.constant dense<0.000000e+00> : vector<32xf32>
    %36 = vector.multi_reduction <add>, %35, %cst_17 [1] : vector<32x32xf32> to vector<32xf32>
    %37 = vector.shape_cast %36 : vector<32xf32> to vector<32x1xf32>
    %cst_18 = arith.constant 5.000000e-01 : f32
    %38 = vector.broadcast %cst_18 : f32 to vector<32x1xf32>
    %39 = arith.mulf %37, %38 : vector<32x1xf32>
    %cst_19 = arith.constant dense<0.000000e+00> : vector<32x16xf32>
    %40 = tpu.matmul %31, %34, %cst_19 {dimension_numbers = #tpu.dot_dimension_numbers<[1], [0], [0], [1], [0, 0, 1, 1], [], []>} : vector<32x32xf32>, vector<32x16xf32>, vector<32x16xf32> -> vector<32x16xf32>
    %41 = vector.broadcast %39 : vector<32x1xf32> to vector<32x16xf32>
    %42 = arith.subf %40, %41 : vector<32x16xf32>
    %43 = math.exp %42 : vector<32x16xf32>
    %cst_20 = arith.constant 2.500000e-01 : f32
    %44 = vector.broadcast %cst_20 : f32 to vector<32x16xf32>
    %45 = arith.mulf %43, %44 : vector<32x16xf32>
    %46 = arith.mulf %32, %32 : vector<32x32xf32>
    %cst_21 = arith.constant dense<0.000000e+00> : vector<32xf32>
    %47 = vector.multi_reduction <add>, %46, %cst_21 [1] : vector<32x32xf32> to vector<32xf32>
    %48 = vector.shape_cast %47 : vector<32xf32> to vector<32x1xf32>
    %cst_22 = arith.constant 5.000000e-01 : f32
    %49 = vector.broadcast %cst_22 : f32 to vector<32x1xf32>
    %50 = arith.mulf %48, %49 : vector<32x1xf32>
    %cst_23 = arith.constant dense<0.000000e+00> : vector<32x16xf32>
    %51 = tpu.matmul %32, %34, %cst_23 {dimension_numbers = #tpu.dot_dimension_numbers<[1], [0], [0], [1], [0, 0, 1, 1], [], []>} : vector<32x32xf32>, vector<32x16xf32>, vector<32x16xf32> -> vector<32x16xf32>
    %52 = vector.broadcast %50 : vector<32x1xf32> to vector<32x16xf32>
    %53 = arith.subf %51, %52 : vector<32x16xf32>
    %54 = math.exp %53 : vector<32x16xf32>
    %cst_24 = arith.constant 2.500000e-01 : f32
    %55 = vector.broadcast %cst_24 : f32 to vector<32x16xf32>
    %56 = arith.mulf %54, %55 : vector<32x16xf32>
    %57 = vector.extract_strided_slice %45 {offsets = [0, 0], sizes = [16, 16], strides = [1, 1]} : vector<32x16xf32> to vector<16x16xf32>
    %58 = vector.extract_strided_slice %56 {offsets = [0, 0], sizes = [16, 16], strides = [1, 1]} : vector<32x16xf32> to vector<16x16xf32>
    %59 = vector.extract_strided_slice %33 {offsets = [0, 0], sizes = [16, 32], strides = [1, 1]} : vector<32x32xf32> to vector<16x32xf32>
    %cst_25 = arith.constant dense<0.000000e+00> : vector<16xf32>
    %60 = vector.multi_reduction <add>, %57, %cst_25 [0] : vector<16x16xf32> to vector<16xf32>
    %61 = vector.shape_cast %60 : vector<16xf32> to vector<1x16xf32>
    %62 = vector.broadcast %61 : vector<1x16xf32> to vector<16x16xf32>
    %63 = arith.mulf %58, %62 : vector<16x16xf32>
    %cst_26 = arith.constant dense<0.000000e+00> : vector<16xf32>
    %64 = vector.multi_reduction <add>, %63, %cst_26 [1] : vector<16x16xf32> to vector<16xf32>
    %65 = vector.shape_cast %64 : vector<16xf32> to vector<16x1xf32>
    %cst_27 = arith.constant dense<0.000000e+00> : vector<16x32xf32>
    %66 = tpu.matmul %57, %59, %cst_27 {dimension_numbers = #tpu.dot_dimension_numbers<[0], [0], [1], [1], [0, 1, 1, 1], [], []>} : vector<16x16xf32>, vector<16x32xf32>, vector<16x32xf32> -> vector<16x32xf32>
    %cst_28 = arith.constant dense<0.000000e+00> : vector<16x32xf32>
    %67 = tpu.matmul %58, %66, %cst_28 {dimension_numbers = #tpu.dot_dimension_numbers<[1], [0], [0], [1], [0, 0, 1, 1], [], []>} : vector<16x16xf32>, vector<16x32xf32>, vector<16x32xf32> -> vector<16x32xf32>
    %cst_29 = arith.constant 9.99999993E-9 : f32
    %68 = vector.broadcast %cst_29 : f32 to vector<16x1xf32>
    %69 = arith.addf %65, %68 : vector<16x1xf32>
    %70 = tpu.reciprocal %69 {approx = true} : vector<16x1xf32> -> vector<16x1xf32>
    %71 = vector.broadcast %70 : vector<16x1xf32> to vector<16x32xf32>
    %72 = arith.mulf %67, %71 : vector<16x32xf32>
    %73 = vector.extract_strided_slice %45 {offsets = [16, 0], sizes = [16, 16], strides = [1, 1]} : vector<32x16xf32> to vector<16x16xf32>
    %74 = vector.extract_strided_slice %56 {offsets = [16, 0], sizes = [16, 16], strides = [1, 1]} : vector<32x16xf32> to vector<16x16xf32>
    %75 = vector.extract_strided_slice %33 {offsets = [16, 0], sizes = [16, 32], strides = [1, 1]} : vector<32x32xf32> to vector<16x32xf32>
    %cst_30 = arith.constant dense<0.000000e+00> : vector<16xf32>
    %76 = vector.multi_reduction <add>, %73, %cst_30 [0] : vector<16x16xf32> to vector<16xf32>
    %77 = vector.shape_cast %76 : vector<16xf32> to vector<1x16xf32>
    %78 = vector.broadcast %77 : vector<1x16xf32> to vector<16x16xf32>
    %79 = arith.mulf %74, %78 : vector<16x16xf32>
    %cst_31 = arith.constant dense<0.000000e+00> : vector<16xf32>
    %80 = vector.multi_reduction <add>, %79, %cst_31 [1] : vector<16x16xf32> to vector<16xf32>
    %81 = vector.shape_cast %80 : vector<16xf32> to vector<16x1xf32>
    %cst_32 = arith.constant dense<0.000000e+00> : vector<16x32xf32>
    %82 = tpu.matmul %73, %75, %cst_32 {dimension_numbers = #tpu.dot_dimension_numbers<[0], [0], [1], [1], [0, 1, 1, 1], [], []>} : vector<16x16xf32>, vector<16x32xf32>, vector<16x32xf32> -> vector<16x32xf32>
    %cst_33 = arith.constant dense<0.000000e+00> : vector<16x32xf32>
    %83 = tpu.matmul %74, %82, %cst_33 {dimension_numbers = #tpu.dot_dimension_numbers<[1], [0], [0], [1], [0, 0, 1, 1], [], []>} : vector<16x16xf32>, vector<16x32xf32>, vector<16x32xf32> -> vector<16x32xf32>
    %cst_34 = arith.constant 9.99999993E-9 : f32
    %84 = vector.broadcast %cst_34 : f32 to vector<16x1xf32>
    %85 = arith.addf %81, %84 : vector<16x1xf32>
    %86 = tpu.reciprocal %85 {approx = true} : vector<16x1xf32> -> vector<16x1xf32>
    %87 = vector.broadcast %86 : vector<16x1xf32> to vector<16x32xf32>
    %88 = arith.mulf %83, %87 : vector<16x32xf32>
    %89 = tpu.concatenate %72, %88 in 0 : vector<16x32xf32>, vector<16x32xf32> -> vector<32x32xf32>
    %c0_35 = arith.constant 0 : index
    %c0_36 = arith.constant 0 : index
    %90 = vector.load %arg7[%c0_35, %c0_36] : memref<32x32xf32, #tpu.memory_space<vmem>>, vector<32x32xf32>
    %cst_37 = arith.constant dense<0.000000e+00> : vector<32x32xf32>
    %91 = tpu.matmul %89, %90, %cst_37 {dimension_numbers = #tpu.dot_dimension_numbers<[1], [0], [0], [1], [0, 0, 1, 1], [], []>} : vector<32x32xf32>, vector<32x32xf32>, vector<32x32xf32> -> vector<32x32xf32>
    %92 = arith.addf %33, %91 : vector<32x32xf32>
    %c0_38 = arith.constant 0 : index
    %c0_39 = arith.constant 0 : index
    %93 = vector.load %arg8[%c0_38, %c0_39] : memref<1x32xf32, #tpu.memory_space<vmem>>, vector<1x32xf32>
    %94 = vector.broadcast %93 : vector<1x32xf32> to vector<32x32xf32>
    %95 = arith.addf %92, %94 : vector<32x32xf32>
    %cst_40 = arith.constant dense<0.000000e+00> : vector<32xf32>
    %96 = vector.multi_reduction <add>, %95, %cst_40 [1] : vector<32x32xf32> to vector<32xf32>
    %97 = vector.shape_cast %96 : vector<32xf32> to vector<32x1xf32>
    %cst_41 = arith.constant 3.200000e+01 : f32
    %98 = vector.broadcast %cst_41 : f32 to vector<32x1xf32>
    %99 = arith.divf %97, %98 : vector<32x1xf32>
    %100 = vector.broadcast %99 : vector<32x1xf32> to vector<32x32xf32>
    %101 = arith.subf %95, %100 : vector<32x32xf32>
    %102 = arith.mulf %101, %101 : vector<32x32xf32>
    %cst_42 = arith.constant dense<0.000000e+00> : vector<32xf32>
    %103 = vector.multi_reduction <add>, %102, %cst_42 [1] : vector<32x32xf32> to vector<32xf32>
    %104 = vector.shape_cast %103 : vector<32xf32> to vector<32x1xf32>
    %cst_43 = arith.constant 3.200000e+01 : f32
    %105 = vector.broadcast %cst_43 : f32 to vector<32x1xf32>
    %106 = arith.divf %104, %105 : vector<32x1xf32>
    %107 = vector.broadcast %99 : vector<32x1xf32> to vector<32x32xf32>
    %108 = arith.subf %95, %107 : vector<32x32xf32>
    %cst_44 = arith.constant 9.99999974E-6 : f32
    %109 = vector.broadcast %cst_44 : f32 to vector<32x1xf32>
    %110 = arith.addf %106, %109 : vector<32x1xf32>
    %111 = math.rsqrt %110 : vector<32x1xf32>
    %112 = vector.broadcast %111 : vector<32x1xf32> to vector<32x32xf32>
    %113 = arith.mulf %108, %112 : vector<32x32xf32>
    %c0_45 = arith.constant 0 : index
    %c0_46 = arith.constant 0 : index
    %114 = vector.load %arg9[%c0_45, %c0_46] : memref<1x32xf32, #tpu.memory_space<vmem>>, vector<1x32xf32>
    %115 = vector.broadcast %114 : vector<1x32xf32> to vector<32x32xf32>
    %116 = arith.mulf %113, %115 : vector<32x32xf32>
    %c0_47 = arith.constant 0 : index
    %c0_48 = arith.constant 0 : index
    %117 = vector.load %arg10[%c0_47, %c0_48] : memref<1x32xf32, #tpu.memory_space<vmem>>, vector<1x32xf32>
    %118 = vector.broadcast %117 : vector<1x32xf32> to vector<32x32xf32>
    %119 = arith.addf %116, %118 : vector<32x32xf32>
    %c0_49 = arith.constant 0 : index
    %c0_50 = arith.constant 0 : index
    %120 = vector.load %arg11[%c0_49, %c0_50] : memref<32x32xf32, #tpu.memory_space<vmem>>, vector<32x32xf32>
    %cst_51 = arith.constant dense<0.000000e+00> : vector<32x32xf32>
    %121 = tpu.matmul %119, %120, %cst_51 {dimension_numbers = #tpu.dot_dimension_numbers<[1], [0], [0], [1], [0, 0, 1, 1], [], []>} : vector<32x32xf32>, vector<32x32xf32>, vector<32x32xf32> -> vector<32x32xf32>
    %c0_52 = arith.constant 0 : index
    %c0_53 = arith.constant 0 : index
    %122 = vector.load %arg12[%c0_52, %c0_53] : memref<1x32xf32, #tpu.memory_space<vmem>>, vector<1x32xf32>
    %123 = vector.broadcast %122 : vector<1x32xf32> to vector<32x32xf32>
    %124 = arith.addf %121, %123 : vector<32x32xf32>
    %cst_54 = arith.constant 5.000000e-01 : f32
    %125 = vector.broadcast %cst_54 : f32 to vector<32x32xf32>
    %126 = arith.mulf %125, %124 : vector<32x32xf32>
    %127 = arith.mulf %124, %124 : vector<32x32xf32>
    %128 = arith.mulf %127, %124 : vector<32x32xf32>
    %cst_55 = arith.constant 4.471500e-02 : f32
    %129 = vector.broadcast %cst_55 : f32 to vector<32x32xf32>
    %130 = arith.mulf %129, %128 : vector<32x32xf32>
    %131 = arith.addf %124, %130 : vector<32x32xf32>
    %cst_56 = arith.constant 0.797884583 : f32
    %132 = vector.broadcast %cst_56 : f32 to vector<32x32xf32>
    %133 = arith.mulf %132, %131 : vector<32x32xf32>
    %134 = math.tanh %133 : vector<32x32xf32>
    %cst_57 = arith.constant 1.000000e+00 : f32
    %135 = vector.broadcast %cst_57 : f32 to vector<32x32xf32>
    %136 = arith.addf %135, %134 : vector<32x32xf32>
    %137 = arith.mulf %126, %136 : vector<32x32xf32>
    %c0_58 = arith.constant 0 : index
    %c0_59 = arith.constant 0 : index
    %138 = vector.load %arg13[%c0_58, %c0_59] : memref<32x32xf32, #tpu.memory_space<vmem>>, vector<32x32xf32>
    %cst_60 = arith.constant dense<0.000000e+00> : vector<32x32xf32>
    %139 = tpu.matmul %137, %138, %cst_60 {dimension_numbers = #tpu.dot_dimension_numbers<[1], [0], [0], [1], [0, 0, 1, 1], [], []>} : vector<32x32xf32>, vector<32x32xf32>, vector<32x32xf32> -> vector<32x32xf32>
    %c0_61 = arith.constant 0 : index
    %c0_62 = arith.constant 0 : index
    %140 = vector.load %arg14[%c0_61, %c0_62] : memref<1x32xf32, #tpu.memory_space<vmem>>, vector<1x32xf32>
    %141 = vector.broadcast %140 : vector<1x32xf32> to vector<32x32xf32>
    %142 = arith.addf %139, %141 : vector<32x32xf32>
    %143 = arith.addf %95, %142 : vector<32x32xf32>
    %144 = vector.shape_cast %143 : vector<32x32xf32> to vector<2x16x32xf32>
    %c0_63 = arith.constant 0 : index
    %c0_64 = arith.constant 0 : index
    %c0_65 = arith.constant 0 : index
    %145 = vector.load %arg15[%c0_63, %c0_64, %c0_65] : memref<2x16x32xf32, #tpu.memory_space<vmem>>, vector<2x16x32xf32>
    tpu.vector_store %arg15[%c0_63, %c0_64, %c0_65], %144 {strides = array<i32>} : memref<2x16x32xf32, #tpu.memory_space<vmem>>, vector<2x16x32xf32>,
    return
  }
  func.func @transform_0(%arg0: i32) -> (i32, i32, i32) {
    %c0_i32 = arith.constant 0 : i32
    %c0_i32_0 = arith.constant 0 : i32
    %c0_i32_1 = arith.constant 0 : i32
    return %arg0, %c0_i32, %c0_i32_0 : i32, i32, i32
  }
  func.func @transform_1(%arg0: i32) -> (i32, i32) {
    %c0_i32 = arith.constant 0 : i32
    %c0_i32_0 = arith.constant 0 : i32
    %c0_i32_1 = arith.constant 0 : i32
    return %c0_i32, %c0_i32_0 : i32, i32
  }
  func.func @transform_2(%arg0: i32) -> (i32, i32) {
    %c0_i32 = arith.constant 0 : i32
    %c0_i32_0 = arith.constant 0 : i32
    %c0_i32_1 = arith.constant 0 : i32
    return %c0_i32, %c0_i32_0 : i32, i32
  }
  func.func @transform_3(%arg0: i32) -> (i32, i32) {
    %c0_i32 = arith.constant 0 : i32
    %c0_i32_0 = arith.constant 0 : i32
    %c0_i32_1 = arith.constant 0 : i32
    return %c0_i32, %c0_i32_0 : i32, i32
  }
  func.func @transform_4(%arg0: i32) -> (i32, i32) {
    %c0_i32 = arith.constant 0 : i32
    %c0_i32_0 = arith.constant 0 : i32
    %c0_i32_1 = arith.constant 0 : i32
    return %c0_i32, %c0_i32_0 : i32, i32
  }
  func.func @transform_5(%arg0: i32) -> (i32, i32) {
    %c0_i32 = arith.constant 0 : i32
    %c0_i32_0 = arith.constant 0 : i32
    %c0_i32_1 = arith.constant 0 : i32
    return %c0_i32, %c0_i32_0 : i32, i32
  }
  func.func @transform_6(%arg0: i32) -> (i32, i32) {
    %c0_i32 = arith.constant 0 : i32
    %c0_i32_0 = arith.constant 0 : i32
    %c0_i32_1 = arith.constant 0 : i32
    return %c0_i32, %c0_i32_0 : i32, i32
  }
  func.func @transform_7(%arg0: i32) -> (i32, i32) {
    %c0_i32 = arith.constant 0 : i32
    %c0_i32_0 = arith.constant 0 : i32
    %c0_i32_1 = arith.constant 0 : i32
    return %c0_i32, %c0_i32_0 : i32, i32
  }
  func.func @transform_8(%arg0: i32) -> (i32, i32) {
    %c0_i32 = arith.constant 0 : i32
    %c0_i32_0 = arith.constant 0 : i32
    %c0_i32_1 = arith.constant 0 : i32
    return %c0_i32, %c0_i32_0 : i32, i32
  }
  func.func @transform_9(%arg0: i32) -> (i32, i32) {
    %c0_i32 = arith.constant 0 : i32
    %c0_i32_0 = arith.constant 0 : i32
    %c0_i32_1 = arith.constant 0 : i32
    return %c0_i32, %c0_i32_0 : i32, i32
  }
  func.func @transform_10(%arg0: i32) -> (i32, i32) {
    %c0_i32 = arith.constant 0 : i32
    %c0_i32_0 = arith.constant 0 : i32
    %c0_i32_1 = arith.constant 0 : i32
    return %c0_i32, %c0_i32_0 : i32, i32
  }
  func.func @transform_11(%arg0: i32) -> (i32, i32) {
    %c0_i32 = arith.constant 0 : i32
    %c0_i32_0 = arith.constant 0 : i32
    %c0_i32_1 = arith.constant 0 : i32
    return %c0_i32, %c0_i32_0 : i32, i32
  }
  func.func @transform_12(%arg0: i32) -> (i32, i32) {
    %c0_i32 = arith.constant 0 : i32
    %c0_i32_0 = arith.constant 0 : i32
    %c0_i32_1 = arith.constant 0 : i32
    return %c0_i32, %c0_i32_0 : i32, i32
  }
  func.func @transform_13(%arg0: i32) -> (i32, i32) {
    %c0_i32 = arith.constant 0 : i32
    %c0_i32_0 = arith.constant 0 : i32
    %c0_i32_1 = arith.constant 0 : i32
    return %c0_i32, %c0_i32_0 : i32, i32
  }
  func.func @transform_14(%arg0: i32) -> (i32, i32, i32) {
    %c0_i32 = arith.constant 0 : i32
    %c0_i32_0 = arith.constant 0 : i32
    %c0_i32_1 = arith.constant 0 : i32
    return %arg0, %c0_i32, %c0_i32_0 : i32, i32, i32
  }
}

</mosaic_0001>

<bundles_post_ra>
// kernel: tpu_custom_call.1
= control target key start
LH: loop header
LB: loop body
LE: loop exit
PB: predicated region body
PF: predicated region fallthrough
CT: control target
= control target key end

     0   :  { %19 = vsyncpa [#allocation3], 0  ;;  %s2616_s0 = inlined_call_operand.hbm [shape: f32[2,16,48], index: 0, kind: input, shape index: {}]   ;;  %s2617_s1 = inlined_call_operand.vmem [shape: f32[1,48], index: 1, kind: input, shape index: {}]   ;;  %s2618_s2 = inlined_call_operand.vmem [shape: f32[1,48], index: 2, kind: input, shape index: {}]   ;;  %s2619_s3 = inlined_call_operand.vmem [shape: f32[48,96], index: 3, kind: input, shape index: {}]   ;;  %s2620_s4 = inlined_call_operand.hbm [shape: f32[1,96], index: 4, kind: input, shape index: {}]   ;;  %s2621_s5 = inlined_call_operand.vmem [shape: f32[32,16], index: 5, kind: input, shape index: {}]   ;;  %s2622_s6 = inlined_call_operand.hbm [shape: f32[32,32], index: 6, kind: input, shape index: {}]   ;;  %s2623_s7 = inlined_call_operand.hbm [shape: f32[1,32], index: 7, kind: input, shape index: {}]   ;;  %s2624_s8 = inlined_call_operand.hbm [shape: f32[1,32], index: 8, kind: input, shape index: {}]   ;;  %s2625_s9 = inlined_call_operand.hbm [shape: f32[1,32], index: 9, kind: input, shape index: {}]   ;;  %s2626_s10 = inlined_call_operand.vmem [shape: f32[32,32], index: 10, kind: input, shape index: {}]   ;;  %s2627_s11 = inlined_call_operand.vmem [shape: f32[1,32], index: 11, kind: input, shape index: {}]   ;;  %s2628_s12 = inlined_call_operand.hbm [shape: f32[32,32], index: 12, kind: input, shape index: {}]   ;;  %s2629_s13 = inlined_call_operand.vmem [shape: f32[1,32], index: 13, kind: input, shape index: {}]   ;;  %s2630_s14 = inlined_call_operand.hbm [shape: f32[2,16,32], index: 14, kind: output, shape index: {}]  }
   0x1   :  { %20 = vsyncpa [#allocation6], 0 }
   0x2   :  { %21 = vsyncpa [#allocation9], 0 }
   0x3   :  { %22 = vsyncpa [#allocation12], 0 }
   0x4   :  { %23 = vsyncpa [#allocation4], 0  ;;  %s2171_s29 = smov [#allocation5]   ;;  %s2172_s15 = smov [#allocation8]  }
   0x5   :  { %s48_s30 = sshll.u32 %s2171_s29, 4  ;;  %s72_s16 = sshll.u32 %s2172_s15, 4  ;;  %s49_s30 = int_to_ptr.vmem [resolvable:$true] %s48_s30  ;;  %s73_s16 = int_to_ptr.vmem [resolvable:$true] %s72_s16 }
   0x6   :  { %s1985_s19 = scalar_lea.hbm %s2620_s4, 16 }
   0x7   :  { %p1986_p0 = scmp.ne.s32.totalorder %s2620_s4, %s1985_s19  ;;  %p1989_p1 = scmp.lt.u32.totalorder %s1985_s19, %s2620_s4 }
   0x9   :  { %p1991_p2 = pnand %p1989_p1, %p1986_p0 }
   0xb   :  { %1994 = shalt.err (!%p1991_p2)
}
   0xc   :  { %s1995_s24 = scalar_lea.vmem %s49_s30, 16  ;;  %s1999_s25 = scalar_lea.vmem %s49_s30, 32 }
   0xd   :  { %p1996_p3 = scmp.ne.s32.totalorder %s49_s30, %s1995_s24  ;;  %p2000_p4 = scmp.lt.s32.totalorder %s49_s30, %s49_s30 }
   0xe   :  { %p2001_p5 = scmp.lt.s32.totalorder %s1999_s25, %s1995_s24 }
  0x10   :  { %p2002_p6 = por %p2001_p5, %p2000_p4 }
  0x12   :  { %p2003_p7 = pnand %p2002_p6, %p1996_p3 }
  0x14   :  { %2006 = shalt.err (!%p2003_p7)
}
  0x15   :  { %51 = dma.hbm_to_vmem [thread:$0]  %s2620_s4, 16, %s49_s30, [#allocation6]  }
  0x16   :  { %s2007_s15 = scalar_lea.hbm %s2623_s7, 16 }
  0x17   :  { %p2008_p8 = scmp.ne.s32.totalorder %s2623_s7, %s2007_s15  ;;  %p2011_p9 = scmp.lt.u32.totalorder %s2007_s15, %s2623_s7 }
  0x19   :  { %p2013_p10 = pnand %p2011_p9, %p2008_p8 }
  0x1b   :  { %2016 = shalt.err (!%p2013_p10)
}
  0x1c   :  { %s2017_s21 = scalar_lea.vmem %s73_s16, 16  ;;  %s2021_s22 = scalar_lea.vmem %s73_s16, 32 }
  0x1d   :  { %p2018_p11 = scmp.ne.s32.totalorder %s73_s16, %s2017_s21  ;;  %p2022_p12 = scmp.lt.s32.totalorder %s73_s16, %s73_s16 }
  0x1e   :  { %p2023_p13 = scmp.lt.s32.totalorder %s2021_s22, %s2017_s21 }
  0x20   :  { %p2024_p0 = por %p2023_p13, %p2022_p12 }
  0x22   :  { %p2025_p1 = pnand %p2024_p0, %p2018_p11 }
  0x24   :  { %2028 = shalt.err (!%p2025_p1)
}
  0x25   :  { %75 = dma.hbm_to_vmem [thread:$0]  %s2623_s7, 16, %s73_s16, [#allocation9]  }
  0x26   :  { %s2173_s23 = smov [#allocation11]   ;;  %s2174_s25 = smov [#allocation2]  }
  0x27   :  { %s92_s24 = sshll.u32 %s2173_s23, 4  ;;  %s29_s26 = sshll.u32 %s2174_s25, 4  ;;  %s93_s24 = int_to_ptr.vmem [resolvable:$true] %s92_s24  ;;  %s2282_s26 = int_to_ptr.vmem [resolvable:$true] %s29_s26 }
  0x28   :  { %s2029_s29 = scalar_lea.hbm %s2625_s9, 16 }
  0x29   :  { %p2030_p2 = scmp.ne.s32.totalorder %s2625_s9, %s2029_s29  ;;  %p2033_p3 = scmp.lt.u32.totalorder %s2029_s29, %s2625_s9 }
  0x2b   :  { %p2035_p4 = pnand %p2033_p3, %p2030_p2 }
  0x2d   :  { %2038 = shalt.err (!%p2035_p4)
}
  0x2e   :  { %s2039_s7 = scalar_lea.vmem %s93_s24, 16  ;;  %s2043_s16 = scalar_lea.vmem %s93_s24, 32 }
  0x2f   :  { %p2040_p5 = scmp.ne.s32.totalorder %s93_s24, %s2039_s7  ;;  %p2044_p6 = scmp.lt.s32.totalorder %s93_s24, %s93_s24 }
  0x30   :  { %p2045_p7 = scmp.lt.s32.totalorder %s2043_s16, %s2039_s7 }
  0x32   :  { %p2046_p8 = por %p2045_p7, %p2044_p6 }
  0x34   :  { %p2047_p9 = pnand %p2046_p8, %p2040_p5 }
  0x36   :  { %2050 = shalt.err (!%p2047_p9)
}
  0x37   :  { %95 = dma.hbm_to_vmem [thread:$0]  %s2625_s9, 16, %s93_s24, [#allocation12]  }
  0x38   :  { %s2051_s30 = scalar_lea.hbm %s2616_s0, 512 }
  0x39   :  { %p2052_p10 = scmp.ne.s32.totalorder %s2616_s0, %s2051_s30  ;;  %p2055_p11 = scmp.lt.u32.totalorder %s2051_s30, %s2616_s0 }
  0x3b   :  { %p2057_p12 = pnand %p2055_p11, %p2052_p10 }
  0x3d   :  { %2060 = shalt.err (!%p2057_p12)
}
  0x3e   :  { %s2061_s29 = scalar_lea.vmem %s2282_s26, 512  ;;  %p2066_p0 = scmp.lt.s32.totalorder %s2282_s26, %s2282_s26 }
  0x3f   :  { %p2062_p13 = scmp.ne.s32.totalorder %s2282_s26, %s2061_s29  ;;  %p2067_p1 = scmp.lt.s32.totalorder %s2061_s29, %s2061_s29 }
  0x41   :  { %p2068_p2 = por %p2067_p1, %p2066_p0 }
  0x43   :  { %p2069_p3 = pnand %p2068_p2, %p2062_p13 }
  0x45   :  { %2072 = shalt.err (!%p2069_p3)
}
  0x46   :  { %s2175_s9 = smov 128   ;;  %s2176_s24 = smov 8  }
  0x47   :  { %35 = dma.hbm_to_vmem [thread:$0]  %s2616_s0, 512, %s2282_s26, [#allocation3], %s2175_s9, %s2175_s9, %s2176_s24  }
  0x48   :  { %s2177_s18 = smov [#allocation7]   ;;  %s2178_s7 = smov [#allocation10]  }
  0x49   :  { %s59_s19 = sshll.u32 %s2177_s18, 4  ;;  %s82_s16 = sshll.u32 %s2178_s7, 4  ;;  %s60_s19 = int_to_ptr.vmem [resolvable:$true] %s59_s19  ;;  %s83_s16 = int_to_ptr.vmem [resolvable:$true] %s82_s16 }
  0x4a   :  { %s2073_s22 = scalar_lea.hbm %s2622_s6, 512 }
  0x4b   :  { %p2074_p4 = scmp.ne.s32.totalorder %s2622_s6, %s2073_s22  ;;  %p2077_p5 = scmp.lt.u32.totalorder %s2073_s22, %s2622_s6 }
  0x4d   :  { %p2079_p6 = pnand %p2077_p5, %p2074_p4 }
  0x4f   :  { %2082 = shalt.err (!%p2079_p6)
}
  0x50   :  { %s2083_s0 = scalar_lea.vmem %s60_s19, 512  ;;  %p2088_p8 = scmp.lt.s32.totalorder %s60_s19, %s60_s19 }
  0x51   :  { %p2084_p7 = scmp.ne.s32.totalorder %s60_s19, %s2083_s0  ;;  %p2089_p9 = scmp.lt.s32.totalorder %s2083_s0, %s2083_s0 }
  0x53   :  { %p2090_p10 = por %p2089_p9, %p2088_p8 }
  0x55   :  { %p2091_p11 = pnand %p2090_p10, %p2084_p7 }
  0x57   :  { %2094 = shalt.err (!%p2091_p11)
}
  0x58   :  { %65 = dma.hbm_to_vmem [thread:$0]  %s2622_s6, 512, %s60_s19, [#allocation6], %s2175_s9, %s2175_s9, %s2176_s24  }
  0x59   :  { %s2095_s15 = scalar_lea.hbm %s2624_s8, 16 }
  0x5a   :  { %p2096_p12 = scmp.ne.s32.totalorder %s2624_s8, %s2095_s15  ;;  %p2099_p13 = scmp.lt.u32.totalorder %s2095_s15, %s2624_s8 }
  0x5c   :  { %p2101_p0 = pnand %p2099_p13, %p2096_p12 }
  0x5e   :  { %2104 = shalt.err (!%p2101_p0)
}
  0x5f   :  { %s2105_s21 = scalar_lea.vmem %s83_s16, 16  ;;  %s2109_s22 = scalar_lea.vmem %s83_s16, 32 }
  0x60   :  { %p2106_p1 = scmp.ne.s32.totalorder %s83_s16, %s2105_s21  ;;  %p2110_p2 = scmp.lt.s32.totalorder %s83_s16, %s83_s16 }
  0x61   :  { %p2111_p3 = scmp.lt.s32.totalorder %s2109_s22, %s2105_s21 }
  0x63   :  { %p2112_p4 = por %p2111_p3, %p2110_p2 }
  0x65   :  { %p2113_p5 = pnand %p2112_p4, %p2106_p1 }
  0x67   :  { %2116 = shalt.err (!%p2113_p5)
}
  0x68   :  { %85 = dma.hbm_to_vmem [thread:$0]  %s2624_s8, 16, %s83_s16, [#allocation9]  }
  0x69   :  { %s2179_s4 = smov [#allocation13]   ;;  %s2117_s0 = scalar_lea.hbm %s2628_s12, 512 }
  0x6a   :  { %s105_s30 = sshll.u32 %s2179_s4, 4  ;;  %p2118_p6 = scmp.ne.s32.totalorder %s2628_s12, %s2117_s0  ;;  %s106_s30 = int_to_ptr.vmem [resolvable:$true] %s105_s30 }
  0x6b   :  { %p2121_p7 = scmp.lt.u32.totalorder %s2117_s0, %s2628_s12 }
  0x6d   :  { %p2123_p8 = pnand %p2121_p7, %p2118_p6 }
  0x6f   :  { %2126 = shalt.err (!%p2123_p8)
}
  0x70   :  { %s2127_s15 = scalar_lea.vmem %s106_s30, 512  ;;  %p2132_p10 = scmp.lt.s32.totalorder %s106_s30, %s106_s30 }
  0x71   :  { %p2128_p9 = scmp.ne.s32.totalorder %s106_s30, %s2127_s15  ;;  %p2133_p11 = scmp.lt.s32.totalorder %s2127_s15, %s2127_s15 }
  0x73   :  { %p2134_p12 = por %p2133_p11, %p2132_p10 }
  0x75   :  { %p2135_p13 = pnand %p2134_p12, %p2128_p9 }
  0x77   :  { %2138 = shalt.err (!%p2135_p13)
}
  0x78   :  { %111 = dma.hbm_to_vmem [thread:$0]  %s2628_s12, 512, %s106_s30, [#allocation12], %s2175_s9, %s2175_s9, %s2176_s24  }
  0x79   :  { %2161 = dma.done.wait [#allocation3], 512  }
  0x7a   :  { %2162 = vsyncadd [#allocation3], 4294966784 }
  0x7b   :  { %2163 = dma.done.wait [#allocation6], 528  }
  0x7c   :  { %2164 = vsyncadd [#allocation6], 4294966768 }
  0x7d   :  { %2165 = dma.done.wait [#allocation9], 32  }
  0x7e   :  { %2166 = vsyncadd [#allocation9], 4294967264 }
  0x7f   :  { %2167 = dma.done.wait [#allocation12], 528  }
  0x80   :  { %2168 = vsyncadd [#allocation12], 4294966768  ;;  %vm139_vm0 = vcmask 392192   ;;  %v135_v0 = vld [vmem:[#allocation2] sm:$0xff]  ;;  %v137_v1 = vld [vmem:[#allocation2 + $0x10] sm:$0xff]  ;;  %vm333_vm1 = vcmask 261120  }
  0x81   :  { %v136_v2 = vld [vmem:[#allocation2 + $0x8] sm:$0xff]  ;;  %v140_v3 = vsel %vm139_vm0, %v135_v0, 0.0  ;;  %v146_v4 = vsel %vm139_vm0, %v137_v1, 0.0  ;;  %v138_v5 = vld [vmem:[#allocation2 + $0x18] sm:$0xff]  ;;  %v215_v28 = vld [vmem:[%s2619_s3] sm:$0xff]  ;;  %s2181_s12 = smov 64  }
  0x82   :  { %141 = vadd.xlane.f32.xlu0 %v140_v3  ;;  %147 = vadd.xlane.f32.xlu1 %v146_v4  ;;  %v143_v6 = vsel %vm139_vm0, %v136_v2, 0.0  ;;  %v149_v7 = vsel %vm139_vm0, %v138_v5, 0.0  ;;  %v216_v29 = vld [vmem:[%s2619_s3 + $0x8] sm:$0xff]  ;;  %v217_v31 = vld [vmem:[%s2619_s3 + $0x10] sm:$0xff]  ;;  %v218_v32 = vld [vmem:[%s2619_s3 + $0x18] sm:$0xff]  ;;  %vm612_vm2 = vcmask 130048  }
  0x83   :  { %v1846_v30 = vpack.c.bf16 %v216_v29, %v215_v28  ;;  %v1850_v33 = vpack.c.bf16 %v218_v32, %v217_v31  ;;  %v219_v34 = vld [vmem:[%s2619_s3 + $0x20] sm:$0xff]  ;;  %v220_v35 = vld [vmem:[%s2619_s3 + $0x28] sm:$0xff] }
  0x84   :  { %v1854_v36 = vpack.c.bf16 %v220_v35, %v219_v34  ;;  %v325_v37 = vld [vmem:[%s2621_s5] sm:$0xff]  ;;  %v326_v38 = vld [vmem:[%s2621_s5 + $0x8] sm:$0xff] }
  0x85   :  { %1847 = vmatprep.subr.bf16.mxu0 %v1846_v30  ;;  %v2394_v39 = vpack.c.bf16 %v326_v38, %v325_v37  ;;  %v1624_v53 = vld [vmem:[%s2617_s1] ss:$0 sm:$0xff] }
  0x86   :  { %144 = vadd.xlane.f32.xlu0 %v143_v6  ;;  %150 = vadd.xlane.f32.xlu1 %v149_v7  ;;  %v1625_v55 = vld [vmem:[%s2618_s2] ss:$0 sm:$0xff]  ;;  %v327_v6 = vld [vmem:[%s2621_s5 + $0x10] sm:$0xff]  ;;  %v328_v7 = vld [vmem:[%s2621_s5 + $0x18] sm:$0xff]  ;;  %s2180_s5 = smov 96  }
  0x87   :  { %1849 = vmatpush3.bf16.msra.mxu0 %v1846_v30  ;;  %1859 = vmatprep.subr.bf16.mxu1 %v2394_v39 }
  0x88   :  { %1851 = vmatprep.subr.bf16.mxu0 %v1850_v33  ;;  %1861 = vmatpush3.bf16.msra.mxu1 %v2394_v39 }
  0x8b   :  { %1853 = vmatpush3.bf16.msra.mxu0 %v1850_v33 }
  0x8c   :  { %1855 = vmatprep.subr.bf16.mxu0 %v1854_v36 }
  0x8f   :  { %1857 = vmatpush3.bf16.msra.mxu0 %v1854_v36 }
 0x10f   :  { %v142_v8 = vpop.xlane.xlu0 %141  ;;  %v148_v9 = vpop.xlane.xlu1 %147 }
 0x110   :  { %v153_v10 = vmul.f32 0.020833334, %v142_v8  ;;  %v155_v11 = vmul.f32 0.020833334, %v148_v9  ;;  %v1862_v8 = vpack.c.bf16 %v328_v7, %v327_v6  ;;  %v1626_v9 = vld [vmem:[#allocation5] ss:$0 sm:$0xff] }
 0x112   :  { %v157_v12 = vsub.f32 %v135_v0, %v153_v10  ;;  %v2362_v13 = vsub.f32 %v137_v1, %v155_v11  ;;  %1863 = vmatprep.subr.bf16.mxu1 %v1862_v8 }
 0x113   :  { %v145_v14 = vpop.xlane.xlu0 %144  ;;  %v151_v15 = vpop.xlane.xlu1 %150  ;;  %1865 = vmatpush3.bf16.msra.mxu1 %v1862_v8 }
 0x114   :  { %v154_v16 = vmul.f32 0.020833334, %v145_v14  ;;  %v156_v17 = vmul.f32 0.020833334, %v151_v15  ;;  %v161_v18 = vmul.f32 %v157_v12, %v157_v12  ;;  %v163_v19 = vmul.f32 %v2362_v13, %v2362_v13  ;;  %1867 = vmatprep.subr.bf16.mxu1 %v2394_v39 }
 0x116   :  { %v158_v20 = vsub.f32 %v136_v2, %v154_v16  ;;  %v160_v21 = vsub.f32 %v138_v5, %v156_v17  ;;  %v165_v22 = vsel %vm139_vm0, %v161_v18, 0.0  ;;  %v171_v23 = vsel %vm139_vm0, %v163_v19, 0.0 }
 0x117   :  { %166 = vadd.xlane.f32.xlu0 %v165_v22 }
 0x118   :  { %v162_v24 = vmul.f32 %v158_v20, %v158_v20  ;;  %v164_v25 = vmul.f32 %v160_v21, %v160_v21 }
 0x11a   :  { %v168_v26 = vsel %vm139_vm0, %v162_v24, 0.0  ;;  %v174_v27 = vsel %vm139_vm0, %v164_v25, 0.0 }
 0x11b   :  { %172 = vadd.xlane.f32.xlu0 %v171_v23  ;;  %169 = vadd.xlane.f32.xlu1 %v168_v26 }
 0x11f   :  { %175 = vadd.xlane.f32.xlu1 %v174_v27 }
 0x1a4   :  { %v167_v40 = vpop.xlane.xlu0 %166 }
 0x1a5   :  { %v177_v41 = vmul.f32 0.020833334, %v167_v40 }
 0x1a7   :  { %v181_v42 = vadd.f32 1e-05, %v177_v41 }
 0x1a8   :  { %v170_v43 = vpop.xlane.xlu1 %169  ;;  %v173_v44 = vpop.xlane.xlu0 %172 }
 0x1a9   :  { %1937 = vrsqrt.f32 %v181_v42  ;;  %v178_v45 = vmul.f32 0.020833334, %v170_v43  ;;  %v179_v46 = vmul.f32 0.020833334, %v173_v44 }
 0x1ab   :  { %v182_v47 = vadd.f32 1e-05, %v178_v45  ;;  %v183_v48 = vadd.f32 1e-05, %v179_v46 }
 0x1ac   :  { %v176_v49 = vpop.xlane.xlu1 %175 }
 0x1ad   :  { %1939 = vrsqrt.f32 %v182_v47  ;;  %v180_v50 = vmul.f32 0.020833334, %v176_v49 }
 0x1ae   :  { %1941 = vrsqrt.f32 %v183_v48 }
 0x1af   :  { %v184_v51 = vadd.f32 1e-05, %v180_v50 }
 0x1b1   :  { %1943 = vrsqrt.f32 %v184_v51 }
 0x1b3   :  { %v1938_v52 = vpop.eup %1937 }
 0x1b4   :  { %v189_v54 = vmul.f32 %v1938_v52, %v157_v12 }
 0x1b6   :  { %v200_v56 = vmul.f32 %v1624_v53, %v189_v54 }
 0x1b7   :  { %v1940_v57 = vpop.eup %1939 }
 0x1b8   :  { %v1942_v58 = vpop.eup %1941  ;;  %v211_v59 = vadd.f32 %v1625_v55, %v200_v56  ;;  %v190_v60 = vmul.f32 %v1940_v57, %v158_v20 }
 0x1b9   :  { %v191_v61 = vmul.f32 %v1942_v58, %v2362_v13 }
 0x1ba   :  { %1742 = vmatprep.mubr.msk.f32.mxu0 %vm139_vm0, %v211_v59  ;;  %v201_v62 = vmul.f32 %v1624_v53, %v190_v60 }
 0x1bb   :  { %v1944_v63 = vpop.eup %1943  ;;  %v202_v0 = vmul.f32 %v1624_v53, %v191_v61 }
 0x1bc   :  { %v212_v1 = vadd.f32 %v1625_v55, %v201_v62  ;;  %v192_v2 = vmul.f32 %v1944_v63, %v160_v21 }
 0x1bd   :  { %v213_v3 = vadd.f32 %v1625_v55, %v202_v0 }
 0x1be   :  { %1743 = vmatmul.mubr.msk.f32.vlgmr.msra.gmra.mrb[0].mxu0 %vm139_vm0, %v212_v1  ;;  %v203_v4 = vmul.f32 %v1624_v53, %v192_v2 }
 0x1bf   :  { %1745 = vmatprep.mubr.msk.f32.mxu0 %vm139_vm0, %v213_v3 }
 0x1c0   :  { %v214_v5 = vadd.f32 %v1625_v55, %v203_v4 }
 0x1c2   :  { %1746 = vmatmul.mubr.msk.f32.gmra.mrb[2].mxu0 %vm139_vm0, %v214_v5 }
 0x291   :  { %v1744_v10 = vpop.f32.mrb[0].mxu0 }
 0x292   :  { %v2416_v11 = vadd.f32 %v1744_v10, %v1626_v9  ;;  %v306_v12 = vpop.f32.mrb[1].mxu0 }
 0x293   :  { %v2418_v13 = vadd.f32 %v1626_v9, %v306_v12 }
 0x294   :  { %v2422_v14 = vmul.f32 %v2416_v11, %v2416_v11 }
 0x295   :  { %v1747_v15 = vpop.f32.mrb[2].mxu0  ;;  %1756 = vmatprep.mubr.msk.f32.mxu1 %vm333_vm1, %v2418_v13  ;;  %v2428_v16 = vmul.f32 %v2418_v13, %v2418_v13  ;;  %v1927_v26 = vpack.i.bf16 %v2416_v11, %v2418_v13 }
 0x296   :  { %v2430_v17 = vadd.f32 %v1747_v15, %v1626_v9  ;;  %v316_v18 = vpop.f32.mrb[3].mxu0  ;;  %1757 = vmatmul.mubr.msk.f32.vlgmr.msra.gmra.mrb[0].mxu1 %vm333_vm1, %v2416_v11  ;;  %v337_v19 = vsel %vm333_vm1, %v2422_v14, 0.0 }
 0x297   :  { %v2436_v20 = vadd.f32 %v1626_v9, %v316_v18  ;;  %338 = vadd.xlane.f32.xlu1 %v337_v19  ;;  %v334_v21 = vsel %vm333_vm1, %v2428_v16, 0.0  ;;  %1869 = vmatpush3.bf16.msra.mxu1 %v2394_v39 }
 0x298   :  { %335 = vadd.xlane.f32.xlu0 %v334_v21  ;;  %v2443_v22 = vmul.f32 %v2430_v17, %v2430_v17  ;;  %1871 = vmatprep.subr.bf16.mxu1 %v1862_v8 }
 0x299   :  { %1759 = vmatprep.mubr.msk.f32.mxu1 %vm333_vm1, %v2436_v20  ;;  %v2449_v23 = vmul.f32 %v2436_v20, %v2436_v20  ;;  %v1932_v27 = vpack.i.bf16 %v2430_v17, %v2436_v20 }
 0x29a   :  { %1760 = vmatmul.mubr.msk.f32.gmra.mrb[2].mxu1 %vm333_vm1, %v2430_v17  ;;  %v343_v24 = vsel %vm333_vm1, %v2443_v22, 0.0 }
 0x29b   :  { %344 = vadd.xlane.f32.xlu1 %v343_v24  ;;  %v340_v25 = vsel %vm333_vm1, %v2449_v23, 0.0  ;;  %1873 = vmatpush3.bf16.msra.mxu1 %v1862_v8 }
 0x29c   :  { %341 = vadd.xlane.f32.xlu0 %v340_v25 }
 0x2ac   :  { %497 = vrot.lane.b32.xlu1 %v2416_v11, %s2180_s5 }
 0x2b0   :  { %499 = vrot.lane.b32.xlu1 %v2436_v20, %s2180_s5 }
 0x2b2   :  { %495 = vrot.lane.b32.xlu0 %v2418_v13, %s2180_s5 }
 0x2b4   :  { %501 = vrot.lane.b32.xlu1 %v2430_v17, %s2180_s5 }
 0x2b6   :  { %1928 = vrot.lane.b32.xlu0 %v1927_v26, %s2181_s12 }
 0x2b8   :  { %1933 = vrot.lane.b32.xlu1 %v1932_v27, %s2181_s12 }
 0x324   :  { %v339_v28 = vpop.xlane.xlu1 %338 }
 0x325   :  { %v336_v29 = vpop.xlane.xlu0 %335  ;;  %v347_v44 = vmul.f32 0.5, %v339_v28 }
 0x326   :  { %v346_v45 = vmul.f32 0.5, %v336_v29 }
 0x328   :  { %v345_v30 = vpop.xlane.xlu1 %344 }
 0x329   :  { %v342_v31 = vpop.xlane.xlu0 %341  ;;  %v349_v50 = vmul.f32 0.5, %v345_v30 }
 0x32a   :  { %v348_v52 = vmul.f32 0.5, %v342_v31 }
 0x32c   :  { %v498_v32 = vpop.permute.xlu1 %497 }
 0x32d   :  { %v496_v33 = vpop.permute.xlu0 %495 }
 0x32e   :  { %1770 = vmatprep.mubr.msk.f32.mxu1 %vm333_vm1, %v496_v33 }
 0x32f   :  { %1771 = vmatmul.mubr.msk.f32.vlgmr.msra.gmra.mrb[4].mxu1 %vm333_vm1, %v498_v32 }
 0x330   :  { %v500_v34 = vpop.permute.xlu1 %499 }
 0x331   :  { %1773 = vmatprep.mubr.msk.f32.mxu1 %vm333_vm1, %v500_v34  ;;  %v1929_v35 = vpop.permute.xlu0 %1928 }
 0x332   :  { %v1931_v36 = vunpack.i.h.bf16 %v1929_v35  ;;  %v1930_v37 = vunpack.i.l.bf16 %v1929_v35 }
 0x334   :  { %v1874_v38 = vpack.c.bf16 %v1931_v36, %v1930_v37  ;;  %v502_v39 = vpop.permute.xlu1 %501 }
 0x335   :  { %1774 = vmatmul.mubr.msk.f32.gmra.mrb[6].mxu1 %vm333_vm1, %v502_v39 }
 0x336   :  { %1875 = vmatprep.subr.bf16.mxu0 %v1874_v38 }
 0x337   :  { %1877 = vmatpush3.bf16.msra.mxu0 %v1874_v38 }
 0x338   :  { %v1934_v40 = vpop.permute.xlu1 %1933 }
 0x339   :  { %v1936_v41 = vunpack.i.h.bf16 %v1934_v40  ;;  %v1935_v42 = vunpack.i.l.bf16 %v1934_v40 }
 0x33b   :  { %v1882_v43 = vpack.c.bf16 %v1936_v41, %v1935_v42 }
 0x33d   :  { %1883 = vmatprep.subr.bf16.mxu1 %v1882_v43 }
 0x33e   :  { %1885 = vmatpush3.bf16.msra.mxu1 %v1882_v43 }
 0x369   :  { %v1758_v46 = vpop.f32.mrb[0].mxu1 }
 0x36a   :  { %v448_v47 = vsub.f32 %v1758_v46, %v347_v44  ;;  %v428_v48 = vpop.f32.mrb[1].mxu1 }
 0x36b   :  { %v447_v49 = vsub.f32 %v428_v48, %v346_v45 }
 0x36c   :  { %v453_v51 = vmul.f32 1.442695, %v448_v47 }
 0x36d   :  { %v451_v53 = vmul.f32 1.442695, %v447_v49  ;;  %v1761_v54 = vpop.f32.mrb[2].mxu1 }
 0x36e   :  { %1945 = vpow2.f32 %v453_v51  ;;  %v450_v55 = vsub.f32 %v1761_v54, %v349_v50  ;;  %v438_v56 = vpop.f32.mrb[3].mxu1 }
 0x36f   :  { %1947 = vpow2.f32 %v451_v53  ;;  %v449_v57 = vsub.f32 %v438_v56, %v348_v52 }
 0x370   :  { %v457_v58 = vmul.f32 1.442695, %v450_v55 }
 0x371   :  { %v455_v59 = vmul.f32 1.442695, %v449_v57 }
 0x372   :  { %1949 = vpow2.f32 %v457_v58 }
 0x373   :  { %1951 = vpow2.f32 %v455_v59 }
 0x378   :  { %v1946_v60 = vpop.eup %1945 }
 0x379   :  { %v1948_v61 = vpop.eup %1947  ;;  %v460_v62 = vmul.f32 0.25, %v1946_v60 }
 0x37a   :  { %v459_v63 = vmul.f32 0.25, %v1948_v61 }
 0x37b   :  { %v614_v0 = vsel %vm612_vm2, %v460_v62, 0.0 }
 0x37c   :  { %v1950_v1 = vpop.eup %1949  ;;  %630 = vxpose.xlu0.b32.start [1/2] (short) (narrow) %v459_v63, 16  ;;  %v613_v2 = vsel %vm612_vm2, %v459_v63, 0.0 }
 0x37d   :  { %v1952_v3 = vpop.eup %1951  ;;  %v615_v4 = vadd.f32 %v614_v0, %v613_v2  ;;  %v462_v5 = vmul.f32 0.25, %v1950_v1 }
 0x37e   :  { %v461_v6 = vmul.f32 0.25, %v1952_v3 }
 0x37f   :  { %v837_v7 = vsel %vm612_vm2, %v462_v5, 0.0  ;;  %v616_v30 = vrot.slane %v615_v4, 4 }
 0x380   :  { %631 = vxpose.xlu0.b32.end [2/2] (short) (narrow) %v460_v62, 16  ;;  %853 = vxpose.xlu1.b32.start [1/2] (short) (narrow) %v461_v6, 16  ;;  %v836_v8 = vsel %vm612_vm2, %v461_v6, 0.0 }
 0x381   :  { %v838_v9 = vadd.f32 %v837_v7, %v836_v8  ;;  %v617_v33 = vadd.f32 %v616_v30, %v615_v4 }
 0x383   :  { %v618_v36 = vrot.slane %v617_v33, 2  ;;  %v839_v39 = vrot.slane %v838_v9, 4 }
 0x384   :  { %854 = vxpose.xlu1.b32.end [2/2] (short) (narrow) %v462_v5, 16 }
 0x385   :  { %v619_v41 = vadd.f32 %v618_v36, %v617_v33  ;;  %v840_v45 = vadd.f32 %v839_v39, %v838_v9 }
 0x387   :  { %v620_v47 = vrot.slane %v619_v41, 1  ;;  %v841_v52 = vrot.slane %v840_v45, 2 }
 0x389   :  { %v621_v55 = vadd.f32 %v620_v47, %v619_v41  ;;  %v842_v58 = vadd.f32 %v841_v52, %v840_v45 }
 0x38b   :  { %v843_v62 = vrot.slane %v842_v58, 1 }
 0x38d   :  { %v844_v3 = vadd.f32 %v843_v62, %v842_v58 }
 0x3a2   :  { %469 = vrot.lane.b32.xlu1 %v2422_v14, %s2180_s5 }
 0x3a6   :  { %473 = vrot.lane.b32.xlu1 %v2443_v22, %s2180_s5 }
 0x3a9   :  { %467 = vrot.lane.b32.xlu0 %v2428_v16, %s2180_s5 }
 0x3ad   :  { %471 = vrot.lane.b32.xlu0 %v2449_v23, %s2180_s5 }
 0x3fc   :  { %v646_v10 = vpop.trf.xlu0 }
 0x3fd   :  { %1780 = vmatprep.mubr.msk.f32.mxu0 %vm612_vm2, %v646_v10 }
 0x400   :  { %v869_v12 = vpop.trf.xlu1  ;;  %v647_v15 = vpop.trf.xlu0 }
 0x401   :  { %1781 = vmatmul.mubr.msk.f32.vlgmr.msra.gmra.mrb[4].mxu0 %vm612_vm2, %v647_v15  ;;  %1794 = vmatprep.mubr.msk.f32.mxu1 %vm612_vm2, %v869_v12 }
 0x402   :  { %v1772_v18 = vpop.f32.mrb[4].mxu1 }
 0x403   :  { %v577_v14 = vpop.f32.mrb[5].mxu1 }
 0x404   :  { %v870_v19 = vpop.trf.xlu1 }
 0x405   :  { %1795 = vmatmul.mubr.msk.f32.vlgmr.msra.gmra.mrb[8].mxu1 %vm612_vm2, %v870_v19  ;;  %v1059_v19 = vld [vmem:[#allocation7] sm:$0xff] }
 0x408   :  { %v1775_v21 = vpop.f32.mrb[6].mxu1 }
 0x409   :  { %v587_v22 = vpop.f32.mrb[7].mxu1 }
 0x414   :  { %v470_v16 = vpop.permute.xlu1 %469 }
 0x415   :  { %v482_v24 = vsel %vm333_vm1, %v470_v16, 0.0 }
 0x416   :  { %483 = vadd.xlane.f32.xlu1 %v482_v24  ;;  %v1061_v24 = vld [vmem:[#allocation7 + $0x10] sm:$0xff] }
 0x418   :  { %v474_v28 = vpop.permute.xlu1 %473 }
 0x419   :  { %v488_v29 = vsel %vm333_vm1, %v474_v28, 0.0 }
 0x41b   :  { %v468_v23 = vpop.permute.xlu0 %467 }
 0x41c   :  { %v479_v25 = vsel %vm333_vm1, %v468_v23, 0.0  ;;  %v1062_v23 = vld [vmem:[#allocation7 + $0x18] sm:$0xff] }
 0x41d   :  { %480 = vadd.xlane.f32.xlu0 %v479_v25  ;;  %v1894_v25 = vpack.c.bf16 %v1062_v23, %v1061_v24 }
 0x41f   :  { %v472_v26 = vpop.permute.xlu0 %471 }
 0x420   :  { %v485_v27 = vsel %vm333_vm1, %v472_v26, 0.0 }
 0x421   :  { %486 = vadd.xlane.f32.xlu0 %v485_v27 }
 0x425   :  { %489 = vadd.xlane.f32.xlu0 %v488_v29 }
 0x4a3   :  { %v484_v31 = vpop.xlane.xlu1 %483 }
 0x4a4   :  { %v492_v32 = vmul.f32 0.5, %v484_v31 }
 0x4a6   :  { %v597_v34 = vsub.f32 %v1772_v18, %v492_v32 }
 0x4a8   :  { %v602_v35 = vmul.f32 1.442695, %v597_v34 }
 0x4aa   :  { %1953 = vpow2.f32 %v602_v35  ;;  %v481_v37 = vpop.xlane.xlu0 %480 }
 0x4ab   :  { %v491_v38 = vmul.f32 0.5, %v481_v37 }
 0x4ad   :  { %v596_v40 = vsub.f32 %v577_v14, %v491_v38 }
 0x4ae   :  { %v487_v42 = vpop.xlane.xlu0 %486 }
 0x4af   :  { %v600_v43 = vmul.f32 1.442695, %v596_v40  ;;  %v493_v44 = vmul.f32 0.5, %v487_v42 }
 0x4b1   :  { %1955 = vpow2.f32 %v600_v43  ;;  %v598_v46 = vsub.f32 %v587_v22, %v493_v44 }
 0x4b2   :  { %v490_v48 = vpop.xlane.xlu0 %489 }
 0x4b3   :  { %v604_v49 = vmul.f32 1.442695, %v598_v46  ;;  %v494_v50 = vmul.f32 0.5, %v490_v48  ;;  %v1651_v48 = vld [vmem:[#allocation8] ss:$0 sm:$0xff] }
 0x4b4   :  { %v1954_v51 = vpop.eup %1953 }
 0x4b5   :  { %1957 = vpow2.f32 %v604_v49  ;;  %v599_v53 = vsub.f32 %v1775_v21, %v494_v50  ;;  %v609_v54 = vmul.f32 0.25, %v1954_v51  ;;  %v1060_v21 = vld [vmem:[#allocation7 + $0x8] sm:$0xff] }
 0x4b6   :  { %v1890_v16 = vpack.c.bf16 %v1060_v21, %v1059_v19 }
 0x4b7   :  { %v606_v56 = vmul.f32 1.442695, %v599_v53  ;;  %v623_v57 = vmul.f32 %v621_v55, %v609_v54 }
 0x4b8   :  { %1891 = vmatprep.subr.bf16.mxu1 %v1890_v16 }
 0x4b9   :  { %1959 = vpow2.f32 %v606_v56  ;;  %v627_v59 = vsel %vm612_vm2, %v623_v57, 0.0  ;;  %1893 = vmatpush3.bf16.msra.mxu1 %v1890_v16 }
 0x4ba   :  { %628 = vadd.xlane.f32.xlu1 %v627_v59  ;;  %1895 = vmatprep.subr.bf16.mxu1 %v1894_v25 }
 0x4bb   :  { %v1956_v60 = vpop.eup %1955 }
 0x4bc   :  { %v608_v61 = vmul.f32 0.25, %v1956_v60 }
 0x4bd   :  { %1897 = vmatpush3.bf16.msra.mxu1 %v1894_v25 }
 0x4be   :  { %1787 = vmatprep.mubr.msk.f32.mxu0 %vm612_vm2, %v608_v61  ;;  %v622_v63 = vmul.f32 %v621_v55, %v608_v61 }
 0x4bf   :  { %v1958_v0 = vpop.eup %1957 }
 0x4c0   :  { %v624_v1 = vsel %vm612_vm2, %v622_v63, 0.0  ;;  %v610_v2 = vmul.f32 0.25, %v1958_v0 }
 0x4c1   :  { %625 = vadd.xlane.f32.xlu0 %v624_v1 }
 0x4c2   :  { %v845_v4 = vmul.f32 %v844_v3, %v610_v2 }
 0x4c3   :  { %v1960_v5 = vpop.eup %1959 }
 0x4c4   :  { %v847_v6 = vsel %vm612_vm2, %v845_v4, 0.0  ;;  %v611_v7 = vmul.f32 0.25, %v1960_v5 }
 0x4c5   :  { %848 = vadd.xlane.f32.xlu0 %v847_v6 }
 0x4c6   :  { %v846_v8 = vmul.f32 %v844_v3, %v611_v7 }
 0x4c8   :  { %v850_v9 = vsel %vm612_vm2, %v846_v8, 0.0 }
 0x4c9   :  { %851 = vadd.xlane.f32.xlu1 %v850_v9 }
 0x4d4   :  { %v1782_v10 = vpop.f32.mrb[4].mxu0 }
 0x4d5   :  { %v740_v12 = vpop.f32.mrb[5].mxu0 }
 0x4d6   :  { %v1878_v15 = vpack.c.bf16 %v1782_v10, %v740_v12 }
 0x4d8   :  { %1879 = vmatprep.subr.bf16.mxu0 %v1878_v15  ;;  %v1796_v18 = vpop.f32.mrb[8].mxu1 }
 0x4d9   :  { %1881 = vmatpush3.bf16.msra.mxu0 %v1878_v15  ;;  %v963_v14 = vpop.f32.mrb[9].mxu1 }
 0x4da   :  { %v1886_v22 = vpack.c.bf16 %v1796_v18, %v963_v14 }
 0x4dc   :  { %1788 = vmatmul.mubr.msk.f32.vlgmr.msra.gmra.mrb[6].mxu0 %vm612_vm2, %v609_v54  ;;  %1887 = vmatprep.subr.bf16.mxu0 %v1886_v22 }
 0x4dd   :  { %1889 = vmatpush3.bf16.msra.mxu0 %v1886_v22  ;;  %1801 = vmatprep.mubr.msk.f32.mxu0 %vm612_vm2, %v610_v2 }
 0x4e0   :  { %1802 = vmatmul.mubr.msk.f32.vlgmr.msra.gmra.mrb[8].mxu0 %vm612_vm2, %v611_v7 }
 0x547   :  { %v629_v27 = vpop.xlane.xlu1 %628 }
 0x548   :  { %v831_v29 = vadd.f32 1e-08, %v629_v27 }
 0x54e   :  { %v626_v26 = vpop.xlane.xlu0 %625 }
 0x54f   :  { %v830_v28 = vadd.f32 1e-08, %v626_v26 }
 0x551   :  { %1961 = vrcp.f32 %v830_v28 }
 0x552   :  { %v849_v30 = vpop.xlane.xlu0 %848  ;;  %1963 = vrcp.f32 %v831_v29 }
 0x553   :  { %v1053_v32 = vadd.f32 1e-08, %v849_v30 }
 0x555   :  { %1965 = vrcp.f32 %v1053_v32  ;;  %v1652_v32 = vld [vmem:[#allocation10] ss:$0 sm:$0xff] }
 0x556   :  { %v852_v31 = vpop.xlane.xlu1 %851 }
 0x557   :  { %v1054_v33 = vadd.f32 1e-08, %v852_v31 }
 0x559   :  { %1967 = vrcp.f32 %v1054_v33  ;;  %v1653_v33 = vld [vmem:[#allocation11] ss:$0 sm:$0xff] }
 0x55b   :  { %v1962_v35 = vpop.eup %1961 }
 0x55c   :  { %v1964_v37 = vpop.eup %1963 }
 0x55f   :  { %v1966_v41 = vpop.eup %1965 }
 0x563   :  { %v1968_v43 = vpop.eup %1967 }
 0x5af   :  { %v1789_v34 = vpop.f32.mrb[6].mxu0 }
 0x5b0   :  { %v821_v36 = vpop.f32.mrb[7].mxu0  ;;  %v835_v39 = vmul.f32 %v1964_v37, %v1789_v34  ;;  %v1304_v34 = vld [vmem:[%s2626_s10] sm:$0xff] }
 0x5b1   :  { %v834_v38 = vmul.f32 %v1962_v35, %v821_v36  ;;  %v1305_v35 = vld [vmem:[%s2626_s10 + $0x8] sm:$0xff] }
 0x5b2   :  { %v1898_v36 = vpack.c.bf16 %v1305_v35, %v1304_v34 }
 0x5b3   :  { %v1803_v40 = vpop.f32.mrb[8].mxu0  ;;  %1812 = vmatprep.mubr.msk.f32.mxu1 %vm333_vm1, %v834_v38 }
 0x5b4   :  { %v1044_v42 = vpop.f32.mrb[9].mxu0  ;;  %1813 = vmatmul.mubr.msk.f32.vlgmr.msra.gmra.mrb[10].mxu1 %vm333_vm1, %v835_v39  ;;  %v1058_v45 = vmul.f32 %v1968_v43, %v1803_v40  ;;  %1899 = vmatprep.subr.bf16.mxu0 %v1898_v36  ;;  %v1306_v43 = vld [vmem:[%s2626_s10 + $0x10] sm:$0xff] }
 0x5b5   :  { %v1057_v44 = vmul.f32 %v1966_v41, %v1044_v42  ;;  %1901 = vmatpush3.bf16.msra.mxu0 %v1898_v36 }
 0x5b7   :  { %1815 = vmatprep.mubr.msk.f32.mxu1 %vm333_vm1, %v1057_v44  ;;  %v1307_v44 = vld [vmem:[%s2626_s10 + $0x18] sm:$0xff] }
 0x5b8   :  { %1816 = vmatmul.mubr.msk.f32.gmra.mrb[12].mxu1 %vm333_vm1, %v1058_v45  ;;  %v1902_v45 = vpack.c.bf16 %v1307_v44, %v1306_v43 }
 0x5ba   :  { %1903 = vmatprep.subr.bf16.mxu0 %v1902_v45 }
 0x5bb   :  { %1905 = vmatpush3.bf16.msra.mxu0 %v1902_v45 }
 0x687   :  { %v1814_v46 = vpop.f32.mrb[10].mxu1 }
 0x688   :  { %1166 = vrot.lane.b32.xlu1 %v1814_v46, %s2181_s12  ;;  %v1141_v47 = vpop.f32.mrb[11].mxu1 }
 0x689   :  { %1164 = vrot.lane.b32.xlu0 %v1141_v47, %s2181_s12 }
 0x68b   :  { %v1817_v49 = vpop.f32.mrb[12].mxu1 }
 0x68c   :  { %1186 = vrot.lane.b32.xlu1 %v1651_v48, %s2181_s12  ;;  %v1151_v50 = vpop.f32.mrb[13].mxu1 }
 0x68d   :  { %1170 = vrot.lane.b32.xlu0 %v1817_v49, %s2181_s12 }
 0x690   :  { %1168 = vrot.lane.b32.xlu1 %v1151_v50, %s2181_s12 }
 0x6fa   :  { %v1167_v51 = vpop.permute.xlu1 %1166 }
 0x6fb   :  { %v1165_v52 = vpop.permute.xlu0 %1164  ;;  %v1177_v54 = vadd.f32 %v1167_v51, %v2416_v11 }
 0x6fc   :  { %v1176_v53 = vadd.f32 %v1165_v52, %v2418_v13 }
 0x6fe   :  { %v1187_v55 = vpop.permute.xlu1 %1186 }
 0x6ff   :  { %v1171_v56 = vpop.permute.xlu0 %1170  ;;  %v2514_v57 = vadd.f32 %v1187_v55, %v1177_v54  ;;  %v2516_v58 = vadd.f32 %v1187_v55, %v1176_v53 }
 0x700   :  { %v1179_v59 = vadd.f32 %v1171_v56, %v2430_v17 }
 0x701   :  { %1199 = vrot.lane.b32.xlu0 %v2514_v57, %s2181_s12  ;;  %1197 = vrot.lane.b32.xlu1 %v2516_v58, %s2181_s12 }
 0x702   :  { %v2523_v60 = vadd.f32 %v1187_v55, %v1179_v59  ;;  %v1169_v61 = vpop.permute.xlu1 %1168 }
 0x703   :  { %v1178_v13 = vadd.f32 %v1169_v61, %v2436_v20 }
 0x705   :  { %v2526_v11 = vadd.f32 %v1187_v55, %v1178_v13  ;;  %1203 = vrot.lane.b32.xlu0 %v2523_v60, %s2181_s12 }
 0x707   :  { %1201 = vrot.lane.b32.xlu1 %v2526_v11, %s2181_s12 }
 0x773   :  { %v1200_v17 = vpop.permute.xlu0 %1199  ;;  %v1198_v62 = vpop.permute.xlu1 %1197 }
 0x774   :  { %v1212_v63 = vsel %vm333_vm1, %v1200_v17, 0.0  ;;  %v1209_v0 = vsel %vm333_vm1, %v1198_v62, 0.0 }
 0x775   :  { %1213 = vadd.xlane.f32.xlu0 %v1212_v63  ;;  %1210 = vadd.xlane.f32.xlu1 %v1209_v0 }
 0x777   :  { %v1204_v20 = vpop.permute.xlu0 %1203 }
 0x778   :  { %v1218_v3 = vsel %vm333_vm1, %v1204_v20, 0.0 }
 0x779   :  { %v1202_v1 = vpop.permute.xlu1 %1201 }
 0x77a   :  { %v1215_v2 = vsel %vm333_vm1, %v1202_v1, 0.0 }
 0x77b   :  { %1216 = vadd.xlane.f32.xlu0 %v1215_v2 }
 0x77f   :  { %1219 = vadd.xlane.f32.xlu0 %v1218_v3 }
 0x802   :  { %v1214_v4 = vpop.xlane.xlu0 %1213  ;;  %v1211_v5 = vpop.xlane.xlu1 %1210 }
 0x803   :  { %v1223_v6 = vmul.f32 0.03125, %v1214_v4  ;;  %v1222_v7 = vmul.f32 0.03125, %v1211_v5 }
 0x805   :  { %v1227_v8 = vsub.f32 %v2514_v57, %v1223_v6  ;;  %v1226_v9 = vsub.f32 %v2516_v58, %v1222_v7 }
 0x807   :  { %v1231_v10 = vmul.f32 %v1227_v8, %v1227_v8  ;;  %v1230_v12 = vmul.f32 %v1226_v9, %v1226_v9 }
 0x808   :  { %v1217_v15 = vpop.xlane.xlu0 %1216 }
 0x809   :  { %v1224_v18 = vmul.f32 0.03125, %v1217_v15  ;;  %1240 = vrot.lane.b32.xlu0 %v1231_v10, %s2181_s12  ;;  %1238 = vrot.lane.b32.xlu1 %v1230_v12, %s2181_s12  ;;  %v1456_v10 = vld [vmem:[#allocation13] sm:$0xff]  ;;  %v1457_v12 = vld [vmem:[#allocation13 + $0x8] sm:$0xff] }
 0x80a   :  { %v1906_v15 = vpack.c.bf16 %v1457_v12, %v1456_v10 }
 0x80b   :  { %v2541_v14 = vsub.f32 %v2526_v11, %v1224_v18  ;;  %v1458_v18 = vld [vmem:[#allocation13 + $0x10] sm:$0xff] }
 0x80c   :  { %v1220_v19 = vpop.xlane.xlu0 %1219  ;;  %1907 = vmatprep.subr.bf16.mxu1 %v1906_v15 }
 0x80d   :  { %v1225_v21 = vmul.f32 0.03125, %v1220_v19  ;;  %v1232_v22 = vmul.f32 %v2541_v14, %v2541_v14  ;;  %1909 = vmatpush3.bf16.msra.mxu1 %v1906_v15 }
 0x80f   :  { %v1229_v16 = vsub.f32 %v2523_v60, %v1225_v21  ;;  %1242 = vrot.lane.b32.xlu1 %v1232_v22, %s2181_s12  ;;  %v1654_v21 = vld [vmem:[%s2627_s11] ss:$0 sm:$0xff] }
 0x811   :  { %v1233_v24 = vmul.f32 %v1229_v16, %v1229_v16 }
 0x813   :  { %1244 = vrot.lane.b32.xlu1 %v1233_v24, %s2181_s12 }
 0x87b   :  { %v1241_v23 = vpop.permute.xlu0 %1240  ;;  %v1239_v25 = vpop.permute.xlu1 %1238 }
 0x87c   :  { %v1253_v26 = vsel %vm333_vm1, %v1241_v23, 0.0  ;;  %v1250_v27 = vsel %vm333_vm1, %v1239_v25, 0.0 }
 0x87d   :  { %1254 = vadd.xlane.f32.xlu0 %v1253_v26  ;;  %1251 = vadd.xlane.f32.xlu1 %v1250_v27 }
 0x881   :  { %v1243_v28 = vpop.permute.xlu1 %1242 }
 0x882   :  { %v1256_v31 = vsel %vm333_vm1, %v1243_v28, 0.0 }
 0x885   :  { %v1245_v29 = vpop.permute.xlu1 %1244 }
 0x886   :  { %v1259_v30 = vsel %vm333_vm1, %v1245_v29, 0.0 }
 0x887   :  { %1260 = vadd.xlane.f32.xlu0 %v1259_v30 }
 0x88b   :  { %1257 = vadd.xlane.f32.xlu0 %v1256_v31 }
 0x88e   :  { %1284 = vrot.lane.b32.xlu1 %v1652_v32, %s2181_s12 }
 0x8a1   :  { %1297 = vrot.lane.b32.xlu0 %v1653_v33, %s2181_s12 }
 0x90a   :  { %v1255_v37 = vpop.xlane.xlu0 %1254  ;;  %v1252_v38 = vpop.xlane.xlu1 %1251 }
 0x90b   :  { %v1263_v39 = vmul.f32 0.03125, %v1255_v37  ;;  %v1262_v40 = vmul.f32 0.03125, %v1252_v38 }
 0x90d   :  { %v1267_v41 = vadd.f32 1e-05, %v1263_v39  ;;  %v1266_v42 = vadd.f32 1e-05, %v1262_v40 }
 0x90e   :  { %v1285_v52 = vpop.permute.xlu1 %1284 }
 0x90f   :  { %1969 = vrsqrt.f32 %v1267_v41 }
 0x910   :  { %1971 = vrsqrt.f32 %v1266_v42 }
 0x914   :  { %v1261_v46 = vpop.xlane.xlu0 %1260 }
 0x915   :  { %v1265_v47 = vmul.f32 0.03125, %v1261_v46 }
 0x917   :  { %v1269_v48 = vadd.f32 1e-05, %v1265_v47 }
 0x918   :  { %v1258_v49 = vpop.xlane.xlu0 %1257 }
 0x919   :  { %v1970_v50 = vpop.eup %1969  ;;  %1973 = vrsqrt.f32 %v1269_v48  ;;  %v1264_v51 = vmul.f32 0.03125, %v1258_v49 }
 0x91a   :  { %v1972_v53 = vpop.eup %1971  ;;  %v1275_v54 = vmul.f32 %v1970_v50, %v1227_v8 }
 0x91b   :  { %v1268_v55 = vadd.f32 1e-05, %v1264_v51  ;;  %v1274_v56 = vmul.f32 %v1972_v53, %v1226_v9 }
 0x91c   :  { %v1288_v59 = vmul.f32 %v1285_v52, %v1275_v54  ;;  %v1298_v61 = vpop.permute.xlu0 %1297 }
 0x91d   :  { %1975 = vrsqrt.f32 %v1268_v55  ;;  %v1287_v13 = vmul.f32 %v1285_v52, %v1274_v56 }
 0x91e   :  { %v1301_v17 = vadd.f32 %v1298_v61, %v1288_v59 }
 0x91f   :  { %v1300_v62 = vadd.f32 %v1298_v61, %v1287_v13 }
 0x920   :  { %1321 = vrot.lane.b32.xlu1 %v1301_v17, %s2181_s12 }
 0x923   :  { %v1974_v63 = vpop.eup %1973 }
 0x924   :  { %v1277_v0 = vmul.f32 %v1974_v63, %v1229_v16  ;;  %1319 = vrot.lane.b32.xlu1 %v1300_v62, %s2181_s12 }
 0x926   :  { %v1290_v1 = vmul.f32 %v1285_v52, %v1277_v0 }
 0x927   :  { %v1976_v2 = vpop.eup %1975 }
 0x928   :  { %v1276_v20 = vmul.f32 %v1976_v2, %v2541_v14  ;;  %v1303_v3 = vadd.f32 %v1298_v61, %v1290_v1  ;;  %v1459_v14 = vld [vmem:[#allocation13 + $0x18] sm:$0xff] }
 0x929   :  { %v1910_v19 = vpack.c.bf16 %v1459_v14, %v1458_v18  ;;  %v1659_v2 = vld [vmem:[%s2629_s13] ss:$0 sm:$0xff]  ;;  %s2182_s13 = smov [#allocation14]  }
 0x92a   :  { %v1289_v4 = vmul.f32 %v1285_v52, %v1276_v20  ;;  %1325 = vrot.lane.b32.xlu0 %v1303_v3, %s2181_s12  ;;  %s1609_s23 = sshll.u32 %s2182_s13, 4  ;;  %s1610_s23 = int_to_ptr.vmem [resolvable:$true] %s1609_s23 }
 0x92b   :  { %1911 = vmatprep.subr.bf16.mxu1 %v1910_v19  ;;  %s2139_s25 = scalar_lea.vmem %s1610_s23, 512  ;;  %p2144_p1 = scmp.lt.s32.totalorder %s1610_s23, %s1610_s23 }
 0x92c   :  { %v1302_v5 = vadd.f32 %v1298_v61, %v1289_v4  ;;  %1913 = vmatpush3.bf16.msra.mxu1 %v1910_v19  ;;  %p2140_p0 = scmp.ne.s32.totalorder %s1610_s23, %s2139_s25  ;;  %p2145_p2 = scmp.lt.s32.totalorder %s2139_s25, %s2139_s25 }
 0x92e   :  { %1323 = vrot.lane.b32.xlu1 %v1302_v5, %s2181_s12  ;;  %p2146_p3 = por %p2145_p2, %p2144_p1 }
 0x930   :  { %p2147_p4 = pnand %p2146_p3, %p2140_p0 }
 0x992   :  { %v1322_v6 = vpop.permute.xlu1 %1321 }
 0x996   :  { %v1320_v7 = vpop.permute.xlu1 %1319 }
 0x997   :  { %1826 = vmatprep.mubr.msk.f32.mxu0 %vm333_vm1, %v1320_v7 }
 0x998   :  { %1827 = vmatmul.mubr.msk.f32.vlgmr.msra.gmra.mrb[10].mxu0 %vm333_vm1, %v1322_v6 }
 0x99c   :  { %v1326_v9 = vpop.permute.xlu0 %1325 }
 0x9a0   :  { %v1324_v8 = vpop.permute.xlu1 %1323 }
 0x9a1   :  { %1829 = vmatprep.mubr.msk.f32.mxu0 %vm333_vm1, %v1324_v8 }
 0x9a2   :  { %1830 = vmatmul.mubr.msk.f32.gmra.mrb[12].mxu0 %vm333_vm1, %v1326_v9 }
 0xa6b   :  { %v1828_v22 = vpop.f32.mrb[10].mxu0 }
 0xa6c   :  { %v1407_v16 = vadd.f32 %v1828_v22, %v1654_v21  ;;  %v1401_v24 = vpop.f32.mrb[11].mxu0 }
 0xa6d   :  { %v1402_v23 = vadd.f32 %v1654_v21, %v1401_v24 }
 0xa6e   :  { %v1425_v25 = vmul.f32 %v1407_v16, %v1407_v16  ;;  %v1421_v54 = vmul.f32 0.5, %v1407_v16 }
 0xa6f   :  { %v1424_v26 = vmul.f32 %v1402_v23, %v1402_v23  ;;  %v1420_v52 = vmul.f32 0.5, %v1402_v23 }
 0xa70   :  { %v1429_v27 = vmul.f32 %v1425_v25, %v1407_v16 }
 0xa71   :  { %v1428_v28 = vmul.f32 %v1424_v26, %v1402_v23 }
 0xa72   :  { %v1433_v29 = vmul.f32 0.044715, %v1429_v27 }
 0xa73   :  { %v1432_v30 = vmul.f32 0.044715, %v1428_v28 }
 0xa74   :  { %v1437_v31 = vadd.f32 %v1433_v29, %v1407_v16 }
 0xa75   :  { %v1436_v32 = vadd.f32 %v1432_v30, %v1402_v23  ;;  %v1831_v33 = vpop.f32.mrb[12].mxu0 }
 0xa76   :  { %v1441_v34 = vmul.f32 0.7978846, %v1437_v31  ;;  %v1417_v35 = vadd.f32 %v1831_v33, %v1654_v21  ;;  %v1411_v36 = vpop.f32.mrb[13].mxu0 }
 0xa77   :  { %v1440_v37 = vmul.f32 0.7978846, %v1436_v32  ;;  %v1412_v38 = vadd.f32 %v1654_v21, %v1411_v36 }
 0xa78   :  { %1977 = vtanh.f32 %v1441_v34  ;;  %v1427_v39 = vmul.f32 %v1417_v35, %v1417_v35  ;;  %v1423_v63 = vmul.f32 0.5, %v1417_v35 }
 0xa79   :  { %1979 = vtanh.f32 %v1440_v37  ;;  %v1426_v40 = vmul.f32 %v1412_v38, %v1412_v38  ;;  %v1422_v17 = vmul.f32 0.5, %v1412_v38 }
 0xa7a   :  { %v1431_v41 = vmul.f32 %v1427_v39, %v1417_v35 }
 0xa7b   :  { %v1430_v42 = vmul.f32 %v1426_v40, %v1412_v38 }
 0xa7c   :  { %v1435_v43 = vmul.f32 0.044715, %v1431_v41 }
 0xa7d   :  { %v1434_v44 = vmul.f32 0.044715, %v1430_v42 }
 0xa7e   :  { %v1439_v45 = vadd.f32 %v1435_v43, %v1417_v35 }
 0xa7f   :  { %v1438_v46 = vadd.f32 %v1434_v44, %v1412_v38 }
 0xa80   :  { %v1443_v47 = vmul.f32 0.7978846, %v1439_v45 }
 0xa81   :  { %v1442_v48 = vmul.f32 0.7978846, %v1438_v46 }
 0xa82   :  { %v1978_v49 = vpop.eup %1977  ;;  %1981 = vtanh.f32 %v1443_v47 }
 0xa83   :  { %v1980_v50 = vpop.eup %1979  ;;  %v1449_v51 = vadd.f32 1.0, %v1978_v49  ;;  %1983 = vtanh.f32 %v1442_v48 }
 0xa84   :  { %v1448_v53 = vadd.f32 1.0, %v1980_v50 }
 0xa85   :  { %v1453_v56 = vmul.f32 %v1449_v51, %v1421_v54 }
 0xa86   :  { %v1452_v55 = vmul.f32 %v1448_v53, %v1420_v52 }
 0xa88   :  { %1840 = vmatprep.mubr.msk.f32.mxu1 %vm333_vm1, %v1452_v55 }
 0xa89   :  { %1841 = vmatmul.mubr.msk.f32.vlgmr.msra.gmra.mrb[14].mxu1 %vm333_vm1, %v1453_v56 }
 0xa8c   :  { %v1982_v59 = vpop.eup %1981 }
 0xa8d   :  { %v1984_v61 = vpop.eup %1983  ;;  %v1451_v13 = vadd.f32 1.0, %v1982_v59 }
 0xa8e   :  { %v1450_v62 = vadd.f32 1.0, %v1984_v61 }
 0xa8f   :  { %v1455_v1 = vmul.f32 %v1451_v13, %v1423_v63 }
 0xa90   :  { %v1454_v0 = vmul.f32 %v1450_v62, %v1422_v17 }
 0xa92   :  { %1843 = vmatprep.mubr.msk.f32.mxu1 %vm333_vm1, %v1454_v0 }
 0xa93   :  { %1844 = vmatmul.mubr.msk.f32.gmra.mrb[16].mxu1 %vm333_vm1, %v1455_v1 }
 0xb5c   :  { %v1842_v20 = vpop.f32.mrb[14].mxu1 }
 0xb5d   :  { %v1551_v3 = vadd.f32 %v1842_v20, %v1659_v2  ;;  %v1545_v4 = vpop.f32.mrb[15].mxu1 }
 0xb5e   :  { %v1546_v5 = vadd.f32 %v1659_v2, %v1545_v4 }
 0xb5f   :  { %1570 = vrot.lane.b32.xlu0 %v1551_v3, %s2181_s12 }
 0xb60   :  { %1568 = vrot.lane.b32.xlu1 %v1546_v5, %s2181_s12 }
 0xb66   :  { %v1845_v6 = vpop.f32.mrb[16].mxu1 }
 0xb67   :  { %v1561_v7 = vadd.f32 %v1845_v6, %v1659_v2  ;;  %v1555_v8 = vpop.f32.mrb[17].mxu1 }
 0xb68   :  { %v1556_v9 = vadd.f32 %v1659_v2, %v1555_v8 }
 0xb69   :  { %1574 = vrot.lane.b32.xlu0 %v1561_v7, %s2181_s12 }
 0xb6a   :  { %1572 = vrot.lane.b32.xlu1 %v1556_v9, %s2181_s12 }
 0xbd1   :  { %v1571_v10 = vpop.permute.xlu0 %1570 }
 0xbd2   :  { %v1581_v12 = vadd.f32 %v1571_v10, %v2514_v57  ;;  %v1569_v15 = vpop.permute.xlu1 %1568 }
 0xbd3   :  { %v1580_v18 = vadd.f32 %v1569_v15, %v2516_v58 }
 0xbd4   :  { %1590 = vrot.lane.b32.xlu0 %v1581_v12, %s2181_s12 }
 0xbd5   :  { %1588 = vrot.lane.b32.xlu1 %v1580_v18, %s2181_s12 }
 0xbdb   :  { %v1575_v14 = vpop.permute.xlu0 %1574 }
 0xbdc   :  { %v1583_v19 = vadd.f32 %v1575_v14, %v2523_v60  ;;  %v1573_v21 = vpop.permute.xlu1 %1572 }
 0xbdd   :  { %v1582_v22 = vadd.f32 %v1573_v21, %v2526_v11 }
 0xbde   :  { %1594 = vrot.lane.b32.xlu0 %v1583_v19, %s2181_s12 }
 0xbdf   :  { %1592 = vrot.lane.b32.xlu1 %v1582_v22, %s2181_s12 }
 0xc46   :  { %v1591_v16 = vpop.permute.xlu0 %1590 }
 0xc47   :  { %1601 = vst.msk [vmem:[#allocation14 + $0x8] sm:$0xff] %vm333_vm1, %v1591_v16  ;;  %v1589_v57 = vpop.permute.xlu1 %1588 }
 0xc48   :  { %1600 = vst.msk [vmem:[#allocation14] sm:$0xff] %vm333_vm1, %v1589_v57 }
 0xc50   :  { %v1595_v58 = vpop.permute.xlu0 %1594 }
 0xc51   :  { %1603 = vst.msk [vmem:[#allocation14 + $0x18] sm:$0xff] %vm333_vm1, %v1595_v58  ;;  %v1593_v60 = vpop.permute.xlu1 %1592 }
 0xc52   :  { %1602 = vst.msk [vmem:[#allocation14 + $0x10] sm:$0xff] %vm333_vm1, %v1593_v60 }
 0xc53   :  { %2150 = shalt.err (!%p2147_p4)
}
 0xc54   :  { %s2151_s27 = scalar_lea.hbm %s2630_s14, 512 }
 0xc55   :  { %p2152_p5 = scmp.ne.s32.totalorder %s2630_s14, %s2151_s27  ;;  %p2155_p6 = scmp.lt.u32.totalorder %s2151_s27, %s2630_s14 }
 0xc57   :  { %p2157_p7 = pnand %p2155_p6, %p2152_p5 }
 0xc59   :  { %2160 = shalt.err (!%p2157_p7)
}
 0xc5a   :  { %1615 = dma.vmem_to_hbm [thread:$0]  %s1610_s23, 512, %s2630_s14, [#allocation4], %s2175_s9, %s2175_s9, %s2176_s24  }
 0xc5b   :  { %2169 = dma.done.wait [#allocation4], 512  }
 0xc5c   :  { %2170 = vsyncadd [#allocation4], 4294966784 }
 0xc5d   :  { %1619 = vsyncpa [#allocation3], 1 }
 0xc5e   :  { %1620 = vsyncpa [#allocation6], 1 }
 0xc5f   :  { %1621 = vsyncpa [#allocation9], 1 }
 0xc60   :  { %1622 = vsyncpa [#allocation12], 1 }
 0xc61   :  { %1623 = vsyncpa [#allocation4], 1 }

</bundles_post_ra>
